<compile_context>
chip_gen: v6e
topology: v6e:2x2x1
jax: 0.10.0
libtpu: 0.0.40
codegen_flags: <defaults>
</compile_context>

<pallas_src>
import functools

import jax
import jax.numpy as jnp
import numpy as np
from jax.experimental import pallas as pl
from jax.experimental.pallas import tpu as pltpu

CARDINALITY = 32
EPS = 1e-5
LANES = 128


def _round_up(x, m):
    return (x + m - 1) // m * m


# ---------------------------------------------------------------------------
# Pallas kernel:
#   conv1(1x1) -> +b1 -> relu
#   conv2(3x3 grouped, block-diagonal expanded, single im2col matmul) -> +b2 -> relu
#   conv3(1x1) -> +b3 -> +residual -> relu
# All weights already have the BN scale folded in; all channel dims padded to CP.
# ---------------------------------------------------------------------------
def _bottleneckx_kernel(x_ref, w1_ref, w2_ref, w3_ref, b_ref, out_ref,
                        pad_ref, patch_ref, *, H, W):
    CP = x_ref.shape[-1]
    HW = H * W

    x = x_ref[0]                                              # (HW, CP)

    # conv1 (1x1, bn1 scale folded into w1) + bias + relu
    h1 = jnp.dot(x, w1_ref[...], preferred_element_type=jnp.float32)
    h1 = jnp.maximum(h1 + b_ref[0:1, :], 0.0)                 # (HW, CP)

    # Zero only the 1-pixel halo border of the padded-activation scratch; the
    # interior is fully overwritten below every step.
    zrow = jnp.zeros((1, W + 2, CP), jnp.float32)
    zcol = jnp.zeros((H + 2, 1, CP), jnp.float32)
    pad_ref[0:1, :, :] = zrow
    pad_ref[H + 1:H + 2, :, :] = zrow
    pad_ref[:, 0:1, :] = zcol
    pad_ref[:, W + 1:W + 2, :] = zcol
    pad_ref[1:H + 1, 1:W + 1, :] = h1.reshape(H, W, CP)

    # im2col: gather the 9 taps into one (HW, 9*CP) patch matrix, then do a
    # single wide matmul against the pre-flattened (9*CP, CP) conv2 weight
    # (bn2 scale folded in).
    for t in range(9):
        dy, dx = t // 3, t % 3
        patch_ref[:, t * CP:(t + 1) * CP] = (
            pad_ref[dy:dy + H, dx:dx + W, :].reshape(HW, CP))
    h2 = jnp.dot(patch_ref[...], w2_ref[...],
                 preferred_element_type=jnp.float32)
    h2 = jnp.maximum(h2 + b_ref[1:2, :], 0.0)                 # (HW, CP)

    # conv3 (1x1, bn3 scale folded) + bias + identity residual + relu
    h3 = jnp.dot(h2, w3_ref[...], preferred_element_type=jnp.float32)
    out_ref[0] = jnp.maximum(h3 + b_ref[2:3, :] + x, 0.0)


def bottleneckx_pallas(x_nchw, kp):
    """x_nchw: (N, Cin, H, W) float32. Returns (N, Cout, H, W)."""
    N, Cin, H, W = x_nchw.shape
    HW = H * W
    CP = kp["cp"]
    Cout = kp["cout"]
    assert Cin == Cout, "identity residual requires Cin == Cout"

    # NCHW -> (N, HW, CP): channels-last, flattened spatial, padded channels.
    x = jnp.transpose(x_nchw, (0, 2, 3, 1)).reshape(N, HW, Cin)
    x = jnp.pad(x, ((0, 0), (0, 0), (0, CP - Cin)))

    flops = 2 * N * HW * (2 * CP * CP + 9 * CP * CP)
    bytes_accessed = 4 * int(x.size + N * HW * CP + kp["w1"].size +
                             kp["w2"].size + kp["w3"].size + kp["biases"].size)

    kernel = functools.partial(_bottleneckx_kernel, H=H, W=W)
    out = pl.pallas_call(
        kernel,
        out_shape=jax.ShapeDtypeStruct((N, HW, CP), jnp.float32),
        grid_spec=pltpu.PrefetchScalarGridSpec(
            num_scalar_prefetch=0,
            grid=(N,),
            in_specs=[
                pl.BlockSpec((1, HW, CP), lambda b: (b, 0, 0)),   # x
                pl.BlockSpec((CP, CP), lambda b: (0, 0)),         # w1
                pl.BlockSpec((9 * CP, CP), lambda b: (0, 0)),     # w2 (im2col)
                pl.BlockSpec((CP, CP), lambda b: (0, 0)),         # w3
                pl.BlockSpec((3, CP), lambda b: (0, 0)),          # biases
            ],
            out_specs=pl.BlockSpec((1, HW, CP), lambda b: (b, 0, 0)),
            scratch_shapes=[
                pltpu.VMEM((H + 2, W + 2, CP), jnp.float32),      # padded acts
                pltpu.VMEM((HW, 9 * CP), jnp.float32),            # im2col patches
            ]),
        compiler_params=pltpu.CompilerParams(
            dimension_semantics=("parallel",),
            vmem_limit_bytes=32 * 1024 * 1024),
        cost_estimate=pl.CostEstimate(
            flops=flops, transcendentals=0, bytes_accessed=bytes_accessed),
    )(x, kp["w1"], kp["w2"], kp["w3"], kp["biases"])

    out = out[:, :, :Cout].reshape(N, H, W, Cout)
    return jnp.transpose(out, (0, 3, 1, 2))  # back to NCHW


# ---------------------------------------------------------------------------
# Parameter construction (deterministic, PyTorch-shaped) + folding / padding.
# ---------------------------------------------------------------------------
def make_params(key, inplanes, planes):
    cardinality = CARDINALITY
    assert planes % cardinality == 0
    bottle_planes = planes * cardinality // 32   # == planes
    cpg = bottle_planes // cardinality           # channels per group

    ks = jax.random.split(key, 6)
    # PyTorch weight layouts: (Cout, Cin[/groups], kh, kw)
    w1_t = jax.random.normal(ks[0], (bottle_planes, inplanes, 1, 1), jnp.float32) * 0.1
    w2_t = jax.random.normal(ks[1], (bottle_planes, cpg, 3, 3), jnp.float32) * 0.1
    w3_t = jax.random.normal(ks[2], (planes, bottle_planes, 1, 1), jnp.float32) * 0.1

    def bn(k, c):
        kg, kb, km, kv = jax.random.split(k, 4)
        gamma = 1.0 + 0.1 * jax.random.normal(kg, (c,), jnp.float32)
        beta = 0.1 * jax.random.normal(kb, (c,), jnp.float32)
        mean = 0.1 * jax.random.normal(km, (c,), jnp.float32)
        var = jnp.abs(jax.random.normal(kv, (c,), jnp.float32)) + 0.5
        return gamma, beta, mean, var

    bn1 = bn(ks[3], bottle_planes)
    bn2 = bn(ks[4], bottle_planes)
    bn3 = bn(ks[5], planes)

    torch_params = dict(w1=w1_t, w2=w2_t, w3=w3_t, bn1=bn1, bn2=bn2, bn3=bn3,
                        groups=cardinality)

    # ---- fold BN (inference mode) into conv weights / biases, pad to lanes ----
    def fold(bn_p):
        gamma, beta, mean, var = bn_p
        scale = gamma / jnp.sqrt(var + EPS)
        bias = beta - mean * scale
        return scale, bias

    s1, b1 = fold(bn1)
    s2, b2 = fold(bn2)
    s3, b3 = fold(bn3)

    Cin, Cb, Cout = inplanes, bottle_planes, planes
    CP = _round_up(max(Cin, Cb, Cout), LANES)

    # 1x1 convs -> (Cin, Cout) matmul matrices with BN scale folded into columns.
    w1_mat = jnp.transpose(w1_t[:, :, 0, 0], (1, 0)) * s1[None, :]
    w3_mat = jnp.transpose(w3_t[:, :, 0, 0], (1, 0)) * s3[None, :]

    # grouped 3x3 -> dense block-diagonal; per-tap (ci, co) matrices stacked on
    # the contraction axis for the single im2col matmul; BN scale folded in.
    w2_np = np.asarray(w2_t)
    w2_dense = np.zeros((Cb, Cb, 3, 3), np.float32)
    for o in range(Cb):
        g = o // cpg
        w2_dense[o, g * cpg:(g + 1) * cpg, :, :] = w2_np[o]
    # tap t = ky*3+kx, matrix[t, ci, co] = W[co, ci, ky, kx]
    w2_taps = jnp.asarray(np.transpose(w2_dense, (2, 3, 1, 0)).reshape(9, Cb, Cb))
    w2_taps = w2_taps * s2[None, None, :]

    def pad2(m, rows, cols):
        return jnp.pad(m, ((0, rows - m.shape[0]), (0, cols - m.shape[1])))

    w1_p = pad2(w1_mat, CP, CP)
    w3_p = pad2(w3_mat, CP, CP)
    w2_p = jnp.pad(w2_taps, ((0, 0), (0, CP - Cb), (0, CP - Cb)))
    w2_p = w2_p.reshape(9 * CP, CP)
    biases = jnp.stack([jnp.pad(b1, (0, CP - Cb)),
                        jnp.pad(b2, (0, CP - Cb)),
                        jnp.pad(b3, (0, CP - Cout))], axis=0)   # (3, CP)

    kernel_params = dict(w1=w1_p, w2=w2_p, w3=w3_p, biases=biases,
                         cout=Cout, cp=CP)
    return torch_params, kernel_params


# ---------------------------------------------------------------------------
# Plain-JAX reference (NCHW, matches PyTorch semantics) for verification.
# ---------------------------------------------------------------------------
def ref_forward(x, tp):
    def bn_apply(h, bn_p):
        gamma, beta, mean, var = bn_p
        inv = gamma / jnp.sqrt(var + EPS)
        return h * inv[None, :, None, None] + (beta - mean * inv)[None, :, None, None]

    dn = jax.lax.conv_dimension_numbers(x.shape, tp["w1"].shape,
                                        ("NCHW", "OIHW", "NCHW"))
    h = jax.lax.conv_general_dilated(x, tp["w1"], (1, 1), "VALID",
                                     dimension_numbers=dn)
    h = jnp.maximum(bn_apply(h, tp["bn1"]), 0.0)
    dn2 = jax.lax.conv_dimension_numbers(h.shape, tp["w2"].shape,
                                         ("NCHW", "OIHW", "NCHW"))
    h = jax.lax.conv_general_dilated(h, tp["w2"], (1, 1), ((1, 1), (1, 1)),
                                     dimension_numbers=dn2,
                                     feature_group_count=tp["groups"])
    h = jnp.maximum(bn_apply(h, tp["bn2"]), 0.0)
    dn3 = jax.lax.conv_dimension_numbers(h.shape, tp["w3"].shape,
                                         ("NCHW", "OIHW", "NCHW"))
    h = jax.lax.conv_general_dilated(h, tp["w3"], (1, 1), "VALID",
                                     dimension_numbers=dn3)
    h = bn_apply(h, tp["bn3"])
    return jnp.maximum(h + x, 0.0)


if __name__ == "__main__":
    key = jax.random.PRNGKey(0)
    kx, kparam = jax.random.split(key)

    # inplanes == planes so the identity residual is well-defined; planes must
    # be a multiple of cardinality (32) for the grouped conv.
    N, C, H, W = 2, 64, 8, 8
    x = jax.random.normal(kx, (N, C, H, W), jnp.float32)

    torch_params, kernel_params = make_params(kparam, inplanes=C, planes=C)

    out = jax.block_until_ready(bottleneckx_pallas(x, kernel_params))
    ref = jax.block_until_ready(ref_forward(x, torch_params))
    np.testing.assert_allclose(np.asarray(out), np.asarray(ref),
                               rtol=1e-4, atol=1e-4)
    print("KERNEL_OK")
</pallas_src>

<mosaic_0001>
module attributes {stable_mosaic.version = 11 : i64} {
  func.func @_bottleneckx_kernel(%arg0: i32, %arg1: memref<1x64x128xf32, #tpu.memory_space<vmem>>, %arg2: memref<128x128xf32, #tpu.memory_space<vmem>>, %arg3: memref<1152x128xf32, #tpu.memory_space<vmem>>, %arg4: memref<128x128xf32, #tpu.memory_space<vmem>>, %arg5: memref<3x128xf32, #tpu.memory_space<vmem>>, %arg6: memref<1x64x128xf32, #tpu.memory_space<vmem>>, %arg7: memref<10x10x128xf32, #tpu.memory_space<vmem>>, %arg8: memref<64x1152xf32, #tpu.memory_space<vmem>>) attributes {dimension_semantics = [#tpu.dimension_semantics<parallel>], iteration_bounds = array<i64: 2>, scalar_prefetch = 0 : i64, scratch_operands = 2 : i64, tpu.core_type = #tpu.core_type<tc>, window_params = [{transform_indices = @transform_0, window_bounds = array<i64: 1, 64, 128>}, {pipeline_mode = #tpu.pipeline_mode<synchronous>, transform_indices = @transform_1, window_bounds = array<i64: 128, 128>}, {pipeline_mode = #tpu.pipeline_mode<synchronous>, transform_indices = @transform_2, window_bounds = array<i64: 1152, 128>}, {pipeline_mode = #tpu.pipeline_mode<synchronous>, transform_indices = @transform_3, window_bounds = array<i64: 128, 128>}, {pipeline_mode = #tpu.pipeline_mode<synchronous>, transform_indices = @transform_4, window_bounds = array<i64: 3, 128>}, {transform_indices = @transform_5, window_bounds = array<i64: 1, 64, 128>}]} {
    %c0 = arith.constant 0 : index
    %c0_0 = arith.constant 0 : index
    %c0_1 = arith.constant 0 : index
    %0 = vector.load %arg1[%c0, %c0_0, %c0_1] : memref<1x64x128xf32, #tpu.memory_space<vmem>>, vector<1x64x128xf32>
    %1 = vector.shape_cast %0 : vector<1x64x128xf32> to vector<64x128xf32>
    %c0_2 = arith.constant 0 : index
    %c0_3 = arith.constant 0 : index
    %2 = vector.load %arg2[%c0_2, %c0_3] : memref<128x128xf32, #tpu.memory_space<vmem>>, vector<128x128xf32>
    %cst = arith.constant dense<0.000000e+00> : vector<64x128xf32>
    %3 = tpu.matmul %1, %2, %cst {dimension_numbers = #tpu.dot_dimension_numbers<[1], [0], [0], [1], [0, 0, 1, 1], [], []>} : vector<64x128xf32>, vector<128x128xf32>, vector<64x128xf32> -> vector<64x128xf32>
    %c0_4 = arith.constant 0 : index
    %c0_5 = arith.constant 0 : index
    %4 = vector.load %arg5[%c0_4, %c0_5] : memref<3x128xf32, #tpu.memory_space<vmem>>, vector<1x128xf32>
    %5 = vector.broadcast %4 : vector<1x128xf32> to vector<64x128xf32>
    %6 = arith.addf %3, %5 : vector<64x128xf32>
    %cst_6 = arith.constant 0.000000e+00 : f32
    %7 = vector.broadcast %cst_6 : f32 to vector<64x128xf32>
    %8 = arith.maximumf %6, %7 : vector<64x128xf32>
    %cst_7 = arith.constant 0.000000e+00 : f32
    %9 = vector.broadcast %cst_7 : f32 to vector<1x10x128xf32>
    %cst_8 = arith.constant 0.000000e+00 : f32
    %10 = vector.broadcast %cst_8 : f32 to vector<10x1x128xf32>
    %c0_9 = arith.constant 0 : index
    %c0_10 = arith.constant 0 : index
    %c0_11 = arith.constant 0 : index
    %11 = vector.load %arg7[%c0_9, %c0_10, %c0_11] : memref<10x10x128xf32, #tpu.memory_space<vmem>>, vector<1x10x128xf32>
    tpu.vector_store %arg7[%c0_9, %c0_10, %c0_11], %9 {strides = array<i32>} : memref<10x10x128xf32, #tpu.memory_space<vmem>>, vector<1x10x128xf32>,
    %c9 = arith.constant 9 : index
    %c0_12 = arith.constant 0 : index
    %c0_13 = arith.constant 0 : index
    %12 = vector.load %arg7[%c9, %c0_12, %c0_13] : memref<10x10x128xf32, #tpu.memory_space<vmem>>, vector<1x10x128xf32>
    tpu.vector_store %arg7[%c9, %c0_12, %c0_13], %9 {strides = array<i32>} : memref<10x10x128xf32, #tpu.memory_space<vmem>>, vector<1x10x128xf32>,
    %c0_14 = arith.constant 0 : index
    %c0_15 = arith.constant 0 : index
    %c0_16 = arith.constant 0 : index
    %13 = vector.load %arg7[%c0_14, %c0_15, %c0_16] : memref<10x10x128xf32, #tpu.memory_space<vmem>>, vector<10x1x128xf32>
    tpu.vector_store %arg7[%c0_14, %c0_15, %c0_16], %10 {strides = array<i32>} : memref<10x10x128xf32, #tpu.memory_space<vmem>>, vector<10x1x128xf32>,
    %c0_17 = arith.constant 0 : index
    %c9_18 = arith.constant 9 : index
    %c0_19 = arith.constant 0 : index
    %14 = vector.load %arg7[%c0_17, %c9_18, %c0_19] : memref<10x10x128xf32, #tpu.memory_space<vmem>>, vector<10x1x128xf32>
    tpu.vector_store %arg7[%c0_17, %c9_18, %c0_19], %10 {strides = array<i32>} : memref<10x10x128xf32, #tpu.memory_space<vmem>>, vector<10x1x128xf32>,
    %15 = vector.shape_cast %8 : vector<64x128xf32> to vector<8x8x128xf32>
    %c1 = arith.constant 1 : index
    %c1_20 = arith.constant 1 : index
    %c0_21 = arith.constant 0 : index
    %16 = vector.load %arg7[%c1, %c1_20, %c0_21] : memref<10x10x128xf32, #tpu.memory_space<vmem>>, vector<8x8x128xf32>
    tpu.vector_store %arg7[%c1, %c1_20, %c0_21], %15 {strides = array<i32>} : memref<10x10x128xf32, #tpu.memory_space<vmem>>, vector<8x8x128xf32>,
    %c0_22 = arith.constant 0 : index
    %c0_23 = arith.constant 0 : index
    %c0_24 = arith.constant 0 : index
    %17 = vector.load %arg7[%c0_22, %c0_23, %c0_24] : memref<10x10x128xf32, #tpu.memory_space<vmem>>, vector<8x8x128xf32>
    %18 = vector.shape_cast %17 : vector<8x8x128xf32> to vector<64x128xf32>
    %c0_25 = arith.constant 0 : index
    %c0_26 = arith.constant 0 : index
    %19 = vector.load %arg8[%c0_25, %c0_26] : memref<64x1152xf32, #tpu.memory_space<vmem>>, vector<64x128xf32>
    tpu.vector_store %arg8[%c0_25, %c0_26], %18 {strides = array<i32>} : memref<64x1152xf32, #tpu.memory_space<vmem>>, vector<64x128xf32>,
    %c0_27 = arith.constant 0 : index
    %c1_28 = arith.constant 1 : index
    %c0_29 = arith.constant 0 : index
    %20 = vector.load %arg7[%c0_27, %c1_28, %c0_29] : memref<10x10x128xf32, #tpu.memory_space<vmem>>, vector<8x8x128xf32>
    %21 = vector.shape_cast %20 : vector<8x8x128xf32> to vector<64x128xf32>
    %c0_30 = arith.constant 0 : index
    %c128 = arith.constant 128 : index
    %22 = vector.load %arg8[%c0_30, %c128] : memref<64x1152xf32, #tpu.memory_space<vmem>>, vector<64x128xf32>
    tpu.vector_store %arg8[%c0_30, %c128], %21 {strides = array<i32>} : memref<64x1152xf32, #tpu.memory_space<vmem>>, vector<64x128xf32>,
    %c0_31 = arith.constant 0 : index
    %c2 = arith.constant 2 : index
    %c0_32 = arith.constant 0 : index
    %23 = vector.load %arg7[%c0_31, %c2, %c0_32] : memref<10x10x128xf32, #tpu.memory_space<vmem>>, vector<8x8x128xf32>
    %24 = vector.shape_cast %23 : vector<8x8x128xf32> to vector<64x128xf32>
    %c0_33 = arith.constant 0 : index
    %c256 = arith.constant 256 : index
    %25 = vector.load %arg8[%c0_33, %c256] : memref<64x1152xf32, #tpu.memory_space<vmem>>, vector<64x128xf32>
    tpu.vector_store %arg8[%c0_33, %c256], %24 {strides = array<i32>} : memref<64x1152xf32, #tpu.memory_space<vmem>>, vector<64x128xf32>,
    %c1_34 = arith.constant 1 : index
    %c0_35 = arith.constant 0 : index
    %c0_36 = arith.constant 0 : index
    %26 = vector.load %arg7[%c1_34, %c0_35, %c0_36] : memref<10x10x128xf32, #tpu.memory_space<vmem>>, vector<8x8x128xf32>
    %27 = vector.shape_cast %26 : vector<8x8x128xf32> to vector<64x128xf32>
    %c0_37 = arith.constant 0 : index
    %c384 = arith.constant 384 : index
    %28 = vector.load %arg8[%c0_37, %c384] : memref<64x1152xf32, #tpu.memory_space<vmem>>, vector<64x128xf32>
    tpu.vector_store %arg8[%c0_37, %c384], %27 {strides = array<i32>} : memref<64x1152xf32, #tpu.memory_space<vmem>>, vector<64x128xf32>,
    %c1_38 = arith.constant 1 : index
    %c1_39 = arith.constant 1 : index
    %c0_40 = arith.constant 0 : index
    %29 = vector.load %arg7[%c1_38, %c1_39, %c0_40] : memref<10x10x128xf32, #tpu.memory_space<vmem>>, vector<8x8x128xf32>
    %30 = vector.shape_cast %29 : vector<8x8x128xf32> to vector<64x128xf32>
    %c0_41 = arith.constant 0 : index
    %c512 = arith.constant 512 : index
    %31 = vector.load %arg8[%c0_41, %c512] : memref<64x1152xf32, #tpu.memory_space<vmem>>, vector<64x128xf32>
    tpu.vector_store %arg8[%c0_41, %c512], %30 {strides = array<i32>} : memref<64x1152xf32, #tpu.memory_space<vmem>>, vector<64x128xf32>,
    %c1_42 = arith.constant 1 : index
    %c2_43 = arith.constant 2 : index
    %c0_44 = arith.constant 0 : index
    %32 = vector.load %arg7[%c1_42, %c2_43, %c0_44] : memref<10x10x128xf32, #tpu.memory_space<vmem>>, vector<8x8x128xf32>
    %33 = vector.shape_cast %32 : vector<8x8x128xf32> to vector<64x128xf32>
    %c0_45 = arith.constant 0 : index
    %c640 = arith.constant 640 : index
    %34 = vector.load %arg8[%c0_45, %c640] : memref<64x1152xf32, #tpu.memory_space<vmem>>, vector<64x128xf32>
    tpu.vector_store %arg8[%c0_45, %c640], %33 {strides = array<i32>} : memref<64x1152xf32, #tpu.memory_space<vmem>>, vector<64x128xf32>,
    %c2_46 = arith.constant 2 : index
    %c0_47 = arith.constant 0 : index
    %c0_48 = arith.constant 0 : index
    %35 = vector.load %arg7[%c2_46, %c0_47, %c0_48] : memref<10x10x128xf32, #tpu.memory_space<vmem>>, vector<8x8x128xf32>
    %36 = vector.shape_cast %35 : vector<8x8x128xf32> to vector<64x128xf32>
    %c0_49 = arith.constant 0 : index
    %c768 = arith.constant 768 : index
    %37 = vector.load %arg8[%c0_49, %c768] : memref<64x1152xf32, #tpu.memory_space<vmem>>, vector<64x128xf32>
    tpu.vector_store %arg8[%c0_49, %c768], %36 {strides = array<i32>} : memref<64x1152xf32, #tpu.memory_space<vmem>>, vector<64x128xf32>,
    %c2_50 = arith.constant 2 : index
    %c1_51 = arith.constant 1 : index
    %c0_52 = arith.constant 0 : index
    %38 = vector.load %arg7[%c2_50, %c1_51, %c0_52] : memref<10x10x128xf32, #tpu.memory_space<vmem>>, vector<8x8x128xf32>
    %39 = vector.shape_cast %38 : vector<8x8x128xf32> to vector<64x128xf32>
    %c0_53 = arith.constant 0 : index
    %c896 = arith.constant 896 : index
    %40 = vector.load %arg8[%c0_53, %c896] : memref<64x1152xf32, #tpu.memory_space<vmem>>, vector<64x128xf32>
    tpu.vector_store %arg8[%c0_53, %c896], %39 {strides = array<i32>} : memref<64x1152xf32, #tpu.memory_space<vmem>>, vector<64x128xf32>,
    %c2_54 = arith.constant 2 : index
    %c2_55 = arith.constant 2 : index
    %c0_56 = arith.constant 0 : index
    %41 = vector.load %arg7[%c2_54, %c2_55, %c0_56] : memref<10x10x128xf32, #tpu.memory_space<vmem>>, vector<8x8x128xf32>
    %42 = vector.shape_cast %41 : vector<8x8x128xf32> to vector<64x128xf32>
    %c0_57 = arith.constant 0 : index
    %c1024 = arith.constant 1024 : index
    %43 = vector.load %arg8[%c0_57, %c1024] : memref<64x1152xf32, #tpu.memory_space<vmem>>, vector<64x128xf32>
    tpu.vector_store %arg8[%c0_57, %c1024], %42 {strides = array<i32>} : memref<64x1152xf32, #tpu.memory_space<vmem>>, vector<64x128xf32>,
    %c0_58 = arith.constant 0 : index
    %c0_59 = arith.constant 0 : index
    %44 = vector.load %arg8[%c0_58, %c0_59] : memref<64x1152xf32, #tpu.memory_space<vmem>>, vector<64x1152xf32>
    %c0_60 = arith.constant 0 : index
    %c0_61 = arith.constant 0 : index
    %45 = vector.load %arg3[%c0_60, %c0_61] : memref<1152x128xf32, #tpu.memory_space<vmem>>, vector<1152x128xf32>
    %cst_62 = arith.constant dense<0.000000e+00> : vector<64x128xf32>
    %46 = tpu.matmul %44, %45, %cst_62 {dimension_numbers = #tpu.dot_dimension_numbers<[1], [0], [0], [1], [0, 0, 1, 1], [], []>} : vector<64x1152xf32>, vector<1152x128xf32>, vector<64x128xf32> -> vector<64x128xf32>
    %c1_63 = arith.constant 1 : index
    %c0_64 = arith.constant 0 : index
    %47 = vector.load %arg5[%c1_63, %c0_64] : memref<3x128xf32, #tpu.memory_space<vmem>>, vector<1x128xf32>
    %48 = vector.broadcast %47 : vector<1x128xf32> to vector<64x128xf32>
    %49 = arith.addf %46, %48 : vector<64x128xf32>
    %cst_65 = arith.constant 0.000000e+00 : f32
    %50 = vector.broadcast %cst_65 : f32 to vector<64x128xf32>
    %51 = arith.maximumf %49, %50 : vector<64x128xf32>
    %c0_66 = arith.constant 0 : index
    %c0_67 = arith.constant 0 : index
    %52 = vector.load %arg4[%c0_66, %c0_67] : memref<128x128xf32, #tpu.memory_space<vmem>>, vector<128x128xf32>
    %cst_68 = arith.constant dense<0.000000e+00> : vector<64x128xf32>
    %53 = tpu.matmul %51, %52, %cst_68 {dimension_numbers = #tpu.dot_dimension_numbers<[1], [0], [0], [1], [0, 0, 1, 1], [], []>} : vector<64x128xf32>, vector<128x128xf32>, vector<64x128xf32> -> vector<64x128xf32>
    %c2_69 = arith.constant 2 : index
    %c0_70 = arith.constant 0 : index
    %54 = vector.load %arg5[%c2_69, %c0_70] : memref<3x128xf32, #tpu.memory_space<vmem>>, vector<1x128xf32>
    %55 = vector.broadcast %54 : vector<1x128xf32> to vector<64x128xf32>
    %56 = arith.addf %53, %55 : vector<64x128xf32>
    %57 = arith.addf %56, %1 : vector<64x128xf32>
    %cst_71 = arith.constant 0.000000e+00 : f32
    %58 = vector.broadcast %cst_71 : f32 to vector<64x128xf32>
    %59 = arith.maximumf %57, %58 : vector<64x128xf32>
    %c0_72 = arith.constant 0 : index
    %c0_73 = arith.constant 0 : index
    %c0_74 = arith.constant 0 : index
    %60 = vector.load %arg6[%c0_72, %c0_73, %c0_74] : memref<1x64x128xf32, #tpu.memory_space<vmem>>, vector<1x64x128xf32>
    %61 = vector.shape_cast %60 : vector<1x64x128xf32> to vector<64x128xf32>
    %62 = vector.shape_cast %59 : vector<64x128xf32> to vector<1x64x128xf32>
    tpu.vector_store %arg6[%c0_72, %c0_73, %c0_74], %62 {strides = array<i32>} : memref<1x64x128xf32, #tpu.memory_space<vmem>>, vector<1x64x128xf32>,
    return
  }
  func.func @transform_0(%arg0: i32) -> (i32, i32, i32) {
    %c0_i32 = arith.constant 0 : i32
    %c0_i32_0 = arith.constant 0 : i32
    %c0_i32_1 = arith.constant 0 : i32
    return %arg0, %c0_i32, %c0_i32_0 : i32, i32, i32
  }
  func.func @transform_1(%arg0: i32) -> (i32, i32) {
    %c0_i32 = arith.constant 0 : i32
    %c0_i32_0 = arith.constant 0 : i32
    %c0_i32_1 = arith.constant 0 : i32
    return %c0_i32, %c0_i32_0 : i32, i32
  }
  func.func @transform_2(%arg0: i32) -> (i32, i32) {
    %c0_i32 = arith.constant 0 : i32
    %c0_i32_0 = arith.constant 0 : i32
    %c0_i32_1 = arith.constant 0 : i32
    return %c0_i32, %c0_i32_0 : i32, i32
  }
  func.func @transform_3(%arg0: i32) -> (i32, i32) {
    %c0_i32 = arith.constant 0 : i32
    %c0_i32_0 = arith.constant 0 : i32
    %c0_i32_1 = arith.constant 0 : i32
    return %c0_i32, %c0_i32_0 : i32, i32
  }
  func.func @transform_4(%arg0: i32) -> (i32, i32) {
    %c0_i32 = arith.constant 0 : i32
    %c0_i32_0 = arith.constant 0 : i32
    %c0_i32_1 = arith.constant 0 : i32
    return %c0_i32, %c0_i32_0 : i32, i32
  }
  func.func @transform_5(%arg0: i32) -> (i32, i32, i32) {
    %c0_i32 = arith.constant 0 : i32
    %c0_i32_0 = arith.constant 0 : i32
    %c0_i32_1 = arith.constant 0 : i32
    return %arg0, %c0_i32, %c0_i32_0 : i32, i32, i32
  }
}

</mosaic_0001>

<bundles_post_ra>
// kernel: tpu_custom_call.1
= control target key start
LH: loop header
LB: loop body
LE: loop exit
PB: predicated region body
PF: predicated region fallthrough
CT: control target
= control target key end

     0   :  { %10 = vsyncpa [#allocation5], 0  ;;  %s2844_s0 = inlined_call_operand.hbm [shape: f32[2,64,128], index: 0, kind: input, shape index: {}]   ;;  %s2845_s1 = inlined_call_operand.hbm [shape: f32[128,128], index: 1, kind: input, shape index: {}]   ;;  %s2846_s2 = inlined_call_operand.hbm [shape: f32[1152,128], index: 2, kind: input, shape index: {}]   ;;  %s2847_s3 = inlined_call_operand.hbm [shape: f32[128,128], index: 3, kind: input, shape index: {}]   ;;  %s2848_s4 = inlined_call_operand.vmem [shape: f32[3,128], index: 4, kind: input, shape index: {}]   ;;  %s2849_s5 = inlined_call_operand.hbm [shape: f32[2,64,128], index: 5, kind: output, shape index: {}]  }
   0x1   :  { %12 = vsyncpa [#allocation5 + $0x1], 0 }
   0x2   :  { %13 = vsyncpa [#allocation8], 0 }
   0x3   :  { %14 = vsyncpa [#allocation11], 0 }
   0x4   :  { %15 = vsyncpa [#allocation6], 0 }
   0x5   :  { %17 = vsyncpa [#allocation6 + $0x1], 0  ;;  %s2423_s18 = smov 0   ;;  %s2425_s19 = smov 0  }
   0x6   :  { %s2427_s20 = smov 0   ;;  %s2429_s21 = smov 0  }
   0x7 LB: > { %s2444_s22 = sadd.s32 4294967295, %s2381_s21   ;;  %s1628_s23 = sadd.s32 4294967294, %s2381_s21   ;;  %s2381_s21 = sphi %s2429_s21, %s2888_s21   ;;  %s2377_s20 = sphi %s2427_s20, %s2887_s20   ;;  %s2373_s19 = sphi %s2425_s19, %s2886_s19   ;;  %s2369_s18 = sphi %s2423_s18, %s2885_s18  }
   0x8   : > { %p43_p0 = scmp.ne.s32.totalorder %s2373_s19, %s2369_s18  ;;  %p2850_p1 = scmp.eq.s32.totalorder %s2444_s22, 0 }
   0x9   : > { %p151_p2 = scmp.eq.s32.totalorder %s2444_s22, 1  ;;  %p157_p3 = scmp.eq.s32.totalorder %s1628_s23, 1 }
   0xa   : > { %p2453_p4 = por %p2850_p1, %p43_p0  ;;  %p1629_p5 = scmp.ge.s32.totalorder %s2381_s21, 1 }
   0xb   : > { %p2458_p6 = por %p157_p3, %p43_p0  ;;  %p164_p7 = scmp.lt.s32.totalorder %s2381_s21, 3 }
   0xc   : > { %s2855_s24 = scalar_select %p2453_p4, 1, 0 }
   0xd   : > { %s2856_s25 = scalar_select %p2458_p6, 1, 0 }
   0xe   : > { %p2463_p8 = pnand %p1629_p5, %p164_p7  ;;  %s2383_s27 = smov [#allocation7]  }
   0xf   : > { %s176_s28 = sshll.u32 %s2383_s27, 4  ;;  %s2384_s30 = smov [#allocation9]   ;;  %s177_s28 = int_to_ptr.vmem [resolvable:$true] %s176_s28 }
  0x10   : > { %s2857_s26 = scalar_select %p2463_p8, 1, 0 }
  0x11   : > { %p2129_p9 = pneg %p2463_p8  ;;  %s189_s6 = sshll.u32 %s2384_s30, 4  ;;  %s190_s6 = int_to_ptr.vmem [resolvable:$true] %s189_s6 }
  0x12   : > { %s2385_s7 = smov [#allocation10]   ;;  %s2214_s9 = scalar_lea.vmem %s177_s28, 2048 }
  0x13   : > { %p2472_p11 = pnand %p2129_p9, %p2850_p1  ;;  %s202_s8 = sshll.u32 %s2385_s7, 4  ;;  %s203_s8 = int_to_ptr.vmem [resolvable:$true] %s202_s8 }
  0x14   : > { %p2215_p13 = scmp.ne.s32.totalorder %s177_s28, %s2214_s9  ;;  %p2222_p5 = scmp.lt.s32.totalorder %s177_s28, %s177_s28 }
  0x15   : > { %p2205_p12 = pneg %p2472_p11  ;;  %p2223_p7 = scmp.lt.s32.totalorder %s2214_s9, %s2214_s9 }
  0x17   : > { %p2217_p0 = pnand %p2215_p13, %p2205_p12  ;;  %p2224_p9 = por %p2223_p7, %p2222_p5 }
  0x19   : > { %p2218_p3 = pneg %p2217_p0 }
  0x1b   : > { %p2225_p10 = pnand %p2224_p9, %p2218_p3 }
  0x1d   : > { %2228 = shalt.err (!%p2225_p10)
}
  0x1e   : > { %s2851_s10 = smov 128   ;;  %s2387_s11 = smov 8  }
  0x1f   : > { %2132 = dma.hbm_to_vmem [thread:$0]  (!%p2472_p11), %s2845_s1, 2048, %s177_s28, [#allocation8], %s2851_s10, %s2851_s10, %s2387_s11  }
  0x20   : > { %s2240_s14 = scalar_lea.vmem %s190_s6, 18432  ;;  %p2248_p3 = scmp.lt.s32.totalorder %s190_s6, %s190_s6 }
  0x21   : > { %p2241_p13 = scmp.ne.s32.totalorder %s190_s6, %s2240_s14  ;;  %p2249_p10 = scmp.lt.s32.totalorder %s2240_s14, %s2240_s14 }
  0x23   : > { %p2243_p0 = pnand %p2241_p13, %p2205_p12  ;;  %p2250_p7 = por %p2249_p10, %p2248_p3 }
  0x25   : > { %p2244_p5 = pneg %p2243_p0 }
  0x27   : > { %p2251_p9 = pnand %p2250_p7, %p2244_p5 }
  0x29   : > { %2254 = shalt.err (!%p2251_p9)
}
  0x2a   : > { %2135 = dma.hbm_to_vmem [thread:$0]  (!%p2472_p11), %s2846_s2, 18432, %s190_s6, [#allocation8], %s2851_s10, %s2851_s10, %s2387_s11  }
  0x2b   : > { %s2266_s17 = scalar_lea.vmem %s203_s8, 2048  ;;  %p2274_p3 = scmp.lt.s32.totalorder %s203_s8, %s203_s8 }
  0x2c   : > { %p2267_p1 = scmp.ne.s32.totalorder %s203_s8, %s2266_s17  ;;  %p2275_p5 = scmp.lt.s32.totalorder %s2266_s17, %s2266_s17 }
  0x2e   : > { %p2269_p13 = pnand %p2267_p1, %p2205_p12  ;;  %p2276_p10 = por %p2275_p5, %p2274_p3 }
  0x30   : > { %p2270_p0 = pneg %p2269_p13 }
  0x32   : > { %p2277_p7 = pnand %p2276_p10, %p2270_p0 }
  0x34   : > { %2280 = shalt.err (!%p2277_p7)
}
  0x35   : > { %2138 = dma.hbm_to_vmem [thread:$0]  (!%p2472_p11), %s2847_s3, 2048, %s203_s8, [#allocation11], %s2851_s10, %s2851_s10, %s2387_s11  }
  0x36   : > { %s2512_s28 = sadd.s32 1, %s2381_s21   ;;  %s30_s30 = sadd.s32 1, %s2377_s20 }
  0x37   : > { %s27_s29 = ssub.s32 %s2381_s21, %s2512_s28  ;;  %p37_p12 = scmp.ne.s32.totalorder %s2377_s20, %s2373_s19 }
  0x38   : > { %p28_p1 = scmp.eq.s32.totalorder %s27_s29, 0  ;;  %p38_p9 = scmp.eq.s32.totalorder %s2381_s21, 0 }
  0x39   : > { %p2150_p13 = scmp.lt.s32.totalorder %s2381_s21, 2  ;;  %p2526_p3 = por %p151_p2, %p37_p12 }
  0x3a   : > { %s2522_s6 = scalar_select %p28_p1, %s2377_s20, %s30_s30  }
  0x3b   : > { %p39_p0 = por %p38_p9, %p37_p12  ;;  %s219_s9 = sand.u32 1, %s2377_s20  }
  0x3c   : > { %s2859_s7 = scalar_select %p2526_p3, 1, 0 }
  0x3d   : > { %s1651_s12 = sshll.u32 %s2381_s21, 10  ;;  %s1634_s8 = sshll.u32 %s219_s9, 6 }
  0x3e   : > { %s2535_s15 = scalar_lea.hbm %s2844_s0, %s1651_s12  ;;  %s223_s16 = scalar_lea.vmem [#allocation4], %s1634_s8 }
  0x3f   : > { %s230_s17 = sshll.u32 %s223_s16, 4  ;;  %p2537_p11 = pnand %p2150_p13, %p39_p0  ;;  %s2541_s17 = int_to_ptr.vmem [resolvable:$true] %s230_s17 }
  0x40   : > { %s2543_s27 = scalar_lea.sflag [#allocation5], %s219_s9  ;;  %s2281_s29 = scalar_lea.hbm %s2535_s15, 1024 }
  0x41   : > { %p2282_p2 = scmp.ne.s32.totalorder %s2535_s15, %s2281_s29  ;;  %p2283_p5 = pneg %p2537_p11 }
  0x42   : > { %s2286_s8 = scalar_lea.hbm %s2844_s0, 2048  ;;  %p2287_p1 = scmp.lt.s32.totalorder %s2535_s15, %s2844_s0 }
  0x43   : > { %p2284_p10 = pnand %p2283_p5, %p2282_p2  ;;  %p2288_p12 = scmp.lt.s32.totalorder %s2286_s8, %s2281_s29 }
  0x45   : > { %p2285_p7 = pneg %p2284_p10  ;;  %p2289_p9 = por %p2288_p12, %p2287_p1 }
  0x47   : > { %p2290_p13 = pnand %p2289_p9, %p2285_p7 }
  0x49   : > { %2293 = shalt.err (!%p2290_p13)
}
  0x4a   : > { %s2294_s9 = scalar_lea.vmem %s2541_s17, 1024  ;;  %s2388_s16 = smov [#allocation4]  }
  0x4b   : > { %p2295_p0 = scmp.ne.s32.totalorder %s2541_s17, %s2294_s9  ;;  %s2299_s10 = sshll.u32 %s2388_s16, 4  ;;  %s2300_s10 = int_to_ptr.vmem [resolvable:$false] %s2299_s10 }
  0x4c   : > { %s2301_s30 = scalar_lea.vmem %s2300_s10, 2048  ;;  %p2302_p10 = scmp.lt.s32.totalorder %s2541_s17, %s2300_s10 }
  0x4d   : > { %p2297_p6 = pnand %p2295_p0, %p2283_p5  ;;  %p2303_p3 = scmp.lt.s32.totalorder %s2301_s30, %s2294_s9 }
  0x4f   : > { %p2298_p2 = pneg %p2297_p6  ;;  %p2304_p4 = por %p2303_p3, %p2302_p10 }
  0x51   : > { %p2305_p8 = pnand %p2304_p4, %p2298_p2 }
  0x53   : > { %2308 = shalt.err (!%p2305_p8)
}
  0x54   : > { %s2861_s29 = smov 128   ;;  %p2862_p6 = scmp.ne.s32.totalorder %s2857_s26, 0 }
  0x55   : > { %2142 = dma.hbm_to_vmem [thread:$0]  (!%p2537_p11), %s2535_s15, 1024, %s2541_s17, %s2543_s27, %s2861_s29, %s2861_s29, %s2387_s11  }
  0x56   : > { %242 = sbr.rel (%p2862_p6) target bundleno = 837 (0x345), region = 40 }
  0x5b   : > { %s2570_s12 = sand.u32 1, %s2373_s19   ;;  %p2863_p4 = scmp.ne.s32.totalorder %s2855_s24, 0 }
  0x5c   : > { %s1638_s10 = sshll.u32 %s2570_s12, 6  ;;  %s245_s8 = scalar_lea.sflag [#allocation5], %s2570_s12 }
  0x5d   : > { %s2576_s23 = scalar_lea.vmem [#allocation4], %s1638_s10 }
  0x5e   : > { %2352 = dma.done.wait (%p2863_p4), %s245_s8, 1024  }
  0x5f   : > { %2354 = vsyncadd (%p2863_p4), %s245_s8, 4294966272  ;;  %p2864_p8 = scmp.eq.s32.totalorder %s2444_s22, 0 }
  0x61   : > { %2356 = dma.done.wait (%p2864_p8), [#allocation8], 20480   ;;  %p2865_p3 = pmov %p2864_p8 }
  0x63   : > { %2358 = vsyncadd (%p2865_p3), [#allocation8], 4294946816  ;;  %p2866_p11 = pmov %p2865_p3 }
  0x64   : > { %p2867_p5 = pmov %p2865_p3 }
  0x65   : > { %2360 = dma.done.wait (%p2866_p11), [#allocation11], 2048  }
  0x66   : > { %2362 = vsyncadd (%p2867_p5), [#allocation11], 4294965248  ;;  %v310_v0 = vld [vmem:[#allocation7 + $0x78] sm:$0xff]  ;;  %v309_v1 = vld [vmem:[#allocation7 + $0x70] sm:$0xff]  ;;  %s2778_s13 = scalar_lea.vmem [#allocation12], %s1638_s10  ;;  %s1652_s9 = sshll.u32 %s2444_s22, 10 }
  0x67   : > { %1949 = vmatprep.subr.mxu0 %v310_v0  ;;  %v308_v2 = vld [vmem:[#allocation7 + $0x68] sm:$0xff]  ;;  %v307_v3 = vld [vmem:[#allocation7 + $0x60] sm:$0xff]  ;;  %v306_v5 = vld [vmem:[#allocation7 + $0x58] sm:$0xff]  ;;  %s1526_s14 = sshll.u32 %s2778_s13, 4  ;;  %s2799_s29 = scalar_lea.hbm %s2849_s5, %s1652_s9  ;;  %s2792_s14 = int_to_ptr.vmem [resolvable:$true] %s1526_s14 }
  0x68   : > { %1950 = vmatpush3.msra.mxu0 %v310_v0  ;;  %v287_v4 = vld [vmem:[%s2576_s23] sm:$0xff]  ;;  %v305_v6 = vld [vmem:[#allocation7 + $0x50] sm:$0xff]  ;;  %v711_v7 = vld [vmem:[#allocation9 + $0xf8] sm:$0xff]  ;;  %s1513_s10 = scalar_lea.sflag [#allocation6], %s2570_s12  ;;  %s2309_s8 = scalar_lea.vmem %s2792_s14, 1024 }
  0x69   : > { %1951 = vmatprep.subr.mxu0 %v309_v1  ;;  %1981 = vmatprep.mubr.f32.mxu0 %v287_v4  ;;  %v695_v8 = vld [vmem:[#allocation9 + $0x78] sm:$0xff]  ;;  %v710_v9 = vld [vmem:[#allocation9 + $0xf0] sm:$0xff]  ;;  %v304_v11 = vld [vmem:[#allocation7 + $0x48] sm:$0xff]  ;;  %p2310_p7 = scmp.ne.s32.totalorder %s2792_s14, %s2309_s8  ;;  %p2882_p1 = scmp.ne.s32.totalorder %s2859_s7, 0 }
  0x6a   : > { %1952 = vmatpush3.msra.mxu0 %v309_v1  ;;  %1677 = vmatprep.subr.mxu1 %v711_v7  ;;  %v694_v10 = vld [vmem:[#allocation9 + $0x70] sm:$0xff]  ;;  %v709_v12 = vld [vmem:[#allocation9 + $0xe8] sm:$0xff]  ;;  %v303_v14 = vld [vmem:[#allocation7 + $0x40] sm:$0xff]  ;;  %v2389_v1 = vmov 0.0   ;;  %s2390_s22 = smov [#allocation12]  }
  0x6b   : > { %1953 = vmatprep.subr.mxu0 %v308_v2  ;;  %1678 = vmatpush3.msra.mxu1 %v695_v8  ;;  %v693_v13 = vld [vmem:[#allocation9 + $0x68] sm:$0xff]  ;;  %v708_v15 = vld [vmem:[#allocation9 + $0xe0] sm:$0xff]  ;;  %v302_v17 = vld [vmem:[#allocation7 + $0x38] sm:$0xff]  ;;  %429 = vst [vmem:[#allocation2] sm:$0xff] %v2389_v1  ;;  %p2311_p12 = pnand %p2310_p7, %p2882_p1  ;;  %s2313_s24 = sshll.u32 %s2390_s22, 4  ;;  %s2314_s24 = int_to_ptr.vmem [resolvable:$false] %s2313_s24 }
  0x6c   : > { %1954 = vmatpush3.msra.mxu0 %v308_v2  ;;  %1679 = vmatprep.subr.mxu1 %v710_v9  ;;  %v692_v16 = vld [vmem:[#allocation9 + $0x60] sm:$0xff]  ;;  %v707_v18 = vld [vmem:[#allocation9 + $0xd8] sm:$0xff]  ;;  %v301_v20 = vld [vmem:[#allocation7 + $0x30] sm:$0xff]  ;;  %430 = vst [vmem:[#allocation2 + $0x8] sm:$0x3] %v2389_v1  ;;  %s2315_s26 = scalar_lea.vmem %s2314_s24, 2048  ;;  %p2316_p13 = scmp.lt.s32.totalorder %s2792_s14, %s2314_s24 }
  0x6d   : > { %1955 = vmatprep.subr.mxu0 %v307_v3  ;;  %1680 = vmatpush3.msra.mxu1 %v694_v10  ;;  %v691_v19 = vld [vmem:[#allocation9 + $0x58] sm:$0xff]  ;;  %v706_v21 = vld [vmem:[#allocation9 + $0xd0] sm:$0xff]  ;;  %v300_v23 = vld [vmem:[#allocation7 + $0x28] sm:$0xff]  ;;  %432 = vst [vmem:[#allocation2 + $0x90] sm:$0xff] %v2389_v1  ;;  %p2312_p9 = pneg %p2311_p12  ;;  %p2317_p0 = scmp.lt.s32.totalorder %s2315_s26, %s2309_s8 }
  0x6e   : > { %1956 = vmatpush3.msra.mxu0 %v307_v3  ;;  %1681 = vmatprep.subr.mxu1 %v709_v12  ;;  %v690_v22 = vld [vmem:[#allocation9 + $0x50] sm:$0xff]  ;;  %v705_v24 = vld [vmem:[#allocation9 + $0xc8] sm:$0xff]  ;;  %v299_v26 = vld [vmem:[#allocation7 + $0x20] sm:$0xff]  ;;  %433 = vst [vmem:[#allocation2 + $0x98] sm:$0x3] %v2389_v1 }
  0x6f   : > { %1957 = vmatprep.subr.mxu0 %v306_v5  ;;  %1682 = vmatpush3.msra.mxu1 %v693_v13  ;;  %v689_v25 = vld [vmem:[#allocation9 + $0x48] sm:$0xff]  ;;  %v704_v27 = vld [vmem:[#allocation9 + $0xc0] sm:$0xff]  ;;  %v298_v29 = vld [vmem:[#allocation7 + $0x18] sm:$0xff]  ;;  %435 = vst [vmem:[#allocation2 + $0x10] sm:$0x1] %v2389_v1  ;;  %p2318_p2 = por %p2317_p0, %p2316_p13 }
  0x70   : > { %1958 = vmatpush3.msra.mxu0 %v306_v5  ;;  %1683 = vmatprep.subr.mxu1 %v708_v15  ;;  %v688_v28 = vld [vmem:[#allocation9 + $0x40] sm:$0xff]  ;;  %v703_v30 = vld [vmem:[#allocation9 + $0xb8] sm:$0xff]  ;;  %v297_v32 = vld [vmem:[#allocation7 + $0x10] sm:$0xff]  ;;  %436 = vst [vmem:[#allocation2 + $0x20] sm:$0x1] %v2389_v1 }
  0x71   : > { %1959 = vmatprep.subr.mxu0 %v305_v6  ;;  %1684 = vmatpush3.msra.mxu1 %v692_v16  ;;  %v687_v31 = vld [vmem:[#allocation9 + $0x38] sm:$0xff]  ;;  %v702_v33 = vld [vmem:[#allocation9 + $0xb0] sm:$0xff]  ;;  %v296_v35 = vld [vmem:[#allocation7 + $0x8] sm:$0xff]  ;;  %437 = vst [vmem:[#allocation2 + $0x30] sm:$0x1] %v2389_v1  ;;  %p2319_p10 = pnand %p2318_p2, %p2312_p9 }
  0x72   : > { %1960 = vmatpush3.msra.mxu0 %v305_v6  ;;  %1685 = vmatprep.subr.mxu1 %v707_v18  ;;  %v686_v34 = vld [vmem:[#allocation9 + $0x30] sm:$0xff]  ;;  %v701_v36 = vld [vmem:[#allocation9 + $0xa8] sm:$0xff]  ;;  %v295_v38 = vld [vmem:[#allocation7] sm:$0xff]  ;;  %438 = vst [vmem:[#allocation2 + $0x40] sm:$0x1] %v2389_v1 }
  0x73   : > { %1961 = vmatprep.subr.mxu0 %v304_v11  ;;  %1686 = vmatpush3.msra.mxu1 %v691_v19  ;;  %v685_v37 = vld [vmem:[#allocation9 + $0x28] sm:$0xff]  ;;  %v743_v40 = vld [vmem:[#allocation9 + $0x1f8] sm:$0xff]  ;;  %v289_v41 = vld [vmem:[%s2576_s23 + $0x10] sm:$0xff]  ;;  %439 = vst [vmem:[#allocation2 + $0x50] sm:$0x1] %v2389_v1 }
  0x74   : > { %1962 = vmatpush3.msra.mxu0 %v304_v11  ;;  %1687 = vmatprep.subr.mxu1 %v706_v21  ;;  %v288_v39 = vld [vmem:[%s2576_s23 + $0x8] sm:$0xff]  ;;  %v727_v42 = vld [vmem:[#allocation9 + $0x178] sm:$0xff]  ;;  %v742_v43 = vld [vmem:[#allocation9 + $0x1f0] sm:$0xff]  ;;  %440 = vst [vmem:[#allocation2 + $0x60] sm:$0x1] %v2389_v1 }
  0x75   : > { %1963 = vmatprep.subr.mxu0 %v303_v14  ;;  %1688 = vmatpush3.msra.mxu1 %v690_v22  ;;  %v726_v44 = vld [vmem:[#allocation9 + $0x170] sm:$0xff]  ;;  %v290_v45 = vld [vmem:[%s2576_s23 + $0x18] sm:$0xff]  ;;  %v741_v46 = vld [vmem:[#allocation9 + $0x1e8] sm:$0xff]  ;;  %441 = vst [vmem:[#allocation2 + $0x70] sm:$0x1] %v2389_v1 }
  0x76   : > { %1964 = vmatpush3.msra.mxu0 %v303_v14  ;;  %1689 = vmatprep.subr.mxu1 %v705_v24  ;;  %v291_v47 = vld [vmem:[%s2576_s23 + $0x20] sm:$0xff]  ;;  %v725_v48 = vld [vmem:[#allocation9 + $0x168] sm:$0xff]  ;;  %v739_v52 = vld [vmem:[#allocation9 + $0x1d8] sm:$0xff]  ;;  %442 = vst [vmem:[#allocation2 + $0x80] sm:$0x1] %v2389_v1 }
  0x77   : > { %1965 = vmatprep.subr.mxu0 %v302_v17  ;;  %1690 = vmatpush3.msra.mxu1 %v689_v25  ;;  %v740_v49 = vld [vmem:[#allocation9 + $0x1e0] sm:$0xff]  ;;  %v292_v51 = vld [vmem:[%s2576_s23 + $0x28] sm:$0xff]  ;;  %v293_v53 = vld [vmem:[%s2576_s23 + $0x30] sm:$0xff]  ;;  %445 = vst [vmem:[#allocation2 + $0x19] sm:$0x1] %v2389_v1 }
  0x78   : > { %1966 = vmatpush3.msra.mxu0 %v302_v17  ;;  %1691 = vmatprep.subr.mxu1 %v704_v27  ;;  %v724_v50 = vld [vmem:[#allocation9 + $0x160] sm:$0xff]  ;;  %v723_v54 = vld [vmem:[#allocation9 + $0x158] sm:$0xff]  ;;  %v738_v55 = vld [vmem:[#allocation9 + $0x1d0] sm:$0xff]  ;;  %446 = vst [vmem:[#allocation2 + $0x29] sm:$0x1] %v2389_v1 }
  0x79   : > { %1967 = vmatprep.subr.mxu0 %v301_v20  ;;  %1692 = vmatpush3.msra.mxu1 %v688_v28  ;;  %v722_v56 = vld [vmem:[#allocation9 + $0x150] sm:$0xff]  ;;  %v294_v57 = vld [vmem:[%s2576_s23 + $0x38] sm:$0xff]  ;;  %v737_v58 = vld [vmem:[#allocation9 + $0x1c8] sm:$0xff]  ;;  %447 = vst [vmem:[#allocation2 + $0x39] sm:$0x1] %v2389_v1 }
  0x7a   : > { %1968 = vmatpush3.msra.mxu0 %v301_v20  ;;  %1693 = vmatprep.subr.mxu1 %v703_v30  ;;  %v721_v59 = vld [vmem:[#allocation9 + $0x148] sm:$0xff]  ;;  %v736_v60 = vld [vmem:[#allocation9 + $0x1c0] sm:$0xff]  ;;  %v699_v0 = vld [vmem:[#allocation9 + $0x98] sm:$0xff]  ;;  %448 = vst [vmem:[#allocation2 + $0x49] sm:$0x1] %v2389_v1 }
  0x7b   : > { %1969 = vmatprep.subr.mxu0 %v300_v23  ;;  %1694 = vmatpush3.msra.mxu1 %v687_v31  ;;  %v720_v61 = vld [vmem:[#allocation9 + $0x140] sm:$0xff]  ;;  %449 = vst [vmem:[#allocation2 + $0x59] sm:$0x1] %v2389_v1  ;;  %450 = vst [vmem:[#allocation2 + $0x69] sm:$0x1] %v2389_v1  ;;  %v683_v2 = vld [vmem:[#allocation9 + $0x18] sm:$0xff] }
  0x7c   : > { %1970 = vmatpush3.msra.mxu0 %v300_v23  ;;  %1695 = vmatprep.subr.mxu1 %v702_v33  ;;  %v700_v62 = vld [vmem:[#allocation9 + $0xa0] sm:$0xff]  ;;  %451 = vst [vmem:[#allocation2 + $0x79] sm:$0x1] %v2389_v1  ;;  %452 = vst [vmem:[#allocation2 + $0x89] sm:$0x1] %v2389_v1  ;;  %v735_v3 = vld [vmem:[#allocation9 + $0x1b8] sm:$0xff] }
  0x7d   : > { %1971 = vmatprep.subr.mxu0 %v299_v26  ;;  %1696 = vmatpush3.msra.mxu1 %v686_v34  ;;  %v684_v63 = vld [vmem:[#allocation9 + $0x20] sm:$0xff]  ;;  %444 = vst [vmem:[#allocation2 + $0x9] sm:$0x1] %v2389_v1  ;;  %434 = vst [vmem:[#allocation2] sm:$0x1] %v2389_v1  ;;  %v698_v4 = vld [vmem:[#allocation9 + $0x90] sm:$0xff] }
  0x7e   : > { %1972 = vmatpush3.msra.mxu0 %v299_v26  ;;  %1697 = vmatprep.subr.mxu1 %v701_v36  ;;  %443 = vst [vmem:[#allocation2 + $0x90] sm:$0x1] %v2389_v1  ;;  %453 = vst [vmem:[#allocation2 + $0x99] sm:$0x1] %v2389_v1  ;;  %v719_v5 = vld [vmem:[#allocation9 + $0x138] sm:$0xff]  ;;  %v682_v6 = vld [vmem:[#allocation9 + $0x10] sm:$0xff] }
  0x7f   : > { %1973 = vmatprep.subr.mxu0 %v298_v29  ;;  %1698 = vmatpush3.msra.mxu1 %v685_v37  ;;  %v734_v7 = vld [vmem:[#allocation9 + $0x1b0] sm:$0xff]  ;;  %v697_v8 = vld [vmem:[#allocation9 + $0x88] sm:$0xff]  ;;  %v696_v12 = vld [vmem:[#allocation9 + $0x80] sm:$0xff] }
  0x80   : > { %1974 = vmatpush3.msra.mxu0 %v298_v29  ;;  %1699 = vmatprep.subr.mxu1 %v700_v62  ;;  %v718_v9 = vld [vmem:[#allocation9 + $0x130] sm:$0xff]  ;;  %v681_v10 = vld [vmem:[#allocation9 + $0x8] sm:$0xff]  ;;  %v680_v14 = vld [vmem:[#allocation9] sm:$0xff] }
  0x81   : > { %1975 = vmatprep.subr.mxu0 %v297_v32  ;;  %1700 = vmatpush3.msra.mxu1 %v684_v63  ;;  %v733_v11 = vld [vmem:[#allocation9 + $0x1a8] sm:$0xff]  ;;  %v732_v16 = vld [vmem:[#allocation9 + $0x1a0] sm:$0xff]  ;;  %v731_v19 = vld [vmem:[#allocation9 + $0x198] sm:$0xff] }
  0x82   : > { %1976 = vmatpush3.msra.mxu0 %v297_v32  ;;  %1701 = vmatprep.subr.mxu1 %v699_v0  ;;  %v717_v13 = vld [vmem:[#allocation9 + $0x128] sm:$0xff]  ;;  %v716_v18 = vld [vmem:[#allocation9 + $0x120] sm:$0xff]  ;;  %v715_v20 = vld [vmem:[#allocation9 + $0x118] sm:$0xff] }
  0x83   : > { %1977 = vmatprep.subr.mxu0 %v296_v35  ;;  %1702 = vmatpush3.msra.mxu1 %v683_v2  ;;  %v479_v15 = vld [vmem:[#allocation2 + $0x1] sm:$0xff]  ;;  %v730_v21 = vld [vmem:[#allocation9 + $0x190] sm:$0xff]  ;;  %v775_v23 = vld [vmem:[#allocation9 + $0x2f8] sm:$0xff] }
  0x84   : > { %1978 = vmatpush3.msra.mxu0 %v296_v35  ;;  %1703 = vmatprep.subr.mxu1 %v698_v4  ;;  %v463_v17 = vld [vmem:[#allocation2] sm:$0xff]  ;;  %v714_v22 = vld [vmem:[#allocation9 + $0x110] sm:$0xff]  ;;  %v729_v24 = vld [vmem:[#allocation9 + $0x188] sm:$0xff] }
  0x85   : > { %1979 = vmatprep.subr.mxu0 %v295_v38  ;;  %1704 = vmatpush3.msra.mxu1 %v682_v6  ;;  %v759_v25 = vld [vmem:[#allocation9 + $0x278] sm:$0xff]  ;;  %v713_v26 = vld [vmem:[#allocation9 + $0x108] sm:$0xff]  ;;  %v774_v27 = vld [vmem:[#allocation9 + $0x2f0] sm:$0xff] }
  0x86   : > { %1980 = vmatpush3.msra.mxu0 %v295_v38  ;;  %1705 = vmatprep.subr.mxu1 %v697_v8  ;;  %v728_v28 = vld [vmem:[#allocation9 + $0x180] sm:$0xff]  ;;  %v758_v29 = vld [vmem:[#allocation9 + $0x270] sm:$0xff]  ;;  %v773_v31 = vld [vmem:[#allocation9 + $0x2e8] sm:$0xff] }
  0x87   : > { %1982 = vmatmul.mubr.f32.vlgmr.msra.gmra.mxu0 %v288_v39  ;;  %1733 = vmatprep.subr.mxu0 %v743_v40  ;;  %v712_v30 = vld [vmem:[#allocation9 + $0x100] sm:$0xff]  ;;  %v757_v32 = vld [vmem:[#allocation9 + $0x268] sm:$0xff]  ;;  %v807_v33 = vld [vmem:[#allocation9 + $0x3f8] sm:$0xff] }
  0x88   : > { %1984 = vmatprep.mubr.f32.mxu0 %v289_v41  ;;  %1734 = vmatpush3.msra.mxu0 %v727_v42  ;;  %v772_v34 = vld [vmem:[#allocation9 + $0x2e0] sm:$0xff]  ;;  %v771_v36 = vld [vmem:[#allocation9 + $0x2d8] sm:$0xff]  ;;  %v770_v38 = vld [vmem:[#allocation9 + $0x2d0] sm:$0xff] }
  0x89   : > { %1735 = vmatprep.subr.mxu0 %v742_v43  ;;  %1706 = vmatpush3.msra.mxu1 %v681_v10  ;;  %v756_v35 = vld [vmem:[#allocation9 + $0x260] sm:$0xff]  ;;  %v755_v37 = vld [vmem:[#allocation9 + $0x258] sm:$0xff]  ;;  %v754_v39 = vld [vmem:[#allocation9 + $0x250] sm:$0xff] }
  0x8a   : > { %1736 = vmatpush3.msra.mxu0 %v726_v44  ;;  %1707 = vmatprep.subr.mxu1 %v696_v12  ;;  %v769_v40 = vld [vmem:[#allocation9 + $0x2c8] sm:$0xff]  ;;  %v768_v42 = vld [vmem:[#allocation9 + $0x2c0] sm:$0xff]  ;;  %v767_v44 = vld [vmem:[#allocation9 + $0x2b8] sm:$0xff] }
  0x8b   : > { %1985 = vmatmul.mubr.f32.gmra.mxu0 %v290_v45  ;;  %1737 = vmatprep.subr.mxu0 %v741_v46  ;;  %v753_v41 = vld [vmem:[#allocation9 + $0x248] sm:$0xff]  ;;  %v752_v43 = vld [vmem:[#allocation9 + $0x240] sm:$0xff]  ;;  %v751_v45 = vld [vmem:[#allocation9 + $0x238] sm:$0xff] }
  0x8c   : > { %1987 = vmatprep.mubr.f32.mxu0 %v291_v47  ;;  %1738 = vmatpush3.msra.mxu0 %v725_v48  ;;  %v766_v46 = vld [vmem:[#allocation9 + $0x2b0] sm:$0xff]  ;;  %v765_v48 = vld [vmem:[#allocation9 + $0x2a8] sm:$0xff] }
  0x8d   : > { %1739 = vmatprep.subr.mxu0 %v740_v49  ;;  %1708 = vmatpush3.msra.mxu1 %v680_v14  ;;  %v750_v47 = vld [vmem:[#allocation9 + $0x230] sm:$0xff]  ;;  %v749_v49 = vld [vmem:[#allocation9 + $0x228] sm:$0xff] }
  0x8e   : > { %1740 = vmatpush3.msra.mxu0 %v724_v50  ;;  %893 = vmatprep.mubr.f32.mxu1 %v479_v15  ;;  %v764_v50 = vld [vmem:[#allocation9 + $0x2a0] sm:$0xff] }
  0x8f   : > { %1988 = vmatmul.mubr.f32.gmra.mxu0 %v292_v51  ;;  %1741 = vmatprep.subr.mxu0 %v739_v52  ;;  %v748_v51 = vld [vmem:[#allocation9 + $0x220] sm:$0xff]  ;;  %v763_v52 = vld [vmem:[#allocation9 + $0x298] sm:$0xff] }
  0x90   : > { %1990 = vmatprep.mubr.f32.mxu0 %v293_v53  ;;  %1742 = vmatpush3.msra.mxu0 %v723_v54  ;;  %v747_v53 = vld [vmem:[#allocation9 + $0x218] sm:$0xff]  ;;  %v762_v54 = vld [vmem:[#allocation9 + $0x290] sm:$0xff] }
  0x91   : > { %1743 = vmatprep.subr.mxu0 %v738_v55  ;;  %894 = vmatmul.mubr.f32.vlgmr.msra.gmra.mxu1 %v463_v17  ;;  %v746_v55 = vld [vmem:[#allocation9 + $0x210] sm:$0xff]  ;;  %v495_v17 = vld [vmem:[#allocation2 + $0x2] sm:$0xff] }
  0x92   : > { %1744 = vmatpush3.msra.mxu0 %v722_v56  ;;  %1789 = vmatprep.subr.mxu1 %v775_v23  ;;  %v761_v56 = vld [vmem:[#allocation9 + $0x288] sm:$0xff] }
  0x93   : > { %1991 = vmatmul.mubr.f32.gmra.mxu0 %v294_v57  ;;  %1745 = vmatprep.subr.mxu0 %v737_v58  ;;  %v745_v57 = vld [vmem:[#allocation9 + $0x208] sm:$0xff]  ;;  %v760_v58 = vld [vmem:[#allocation9 + $0x280] sm:$0xff] }
  0x94   : > { %1746 = vmatpush3.msra.mxu0 %v721_v59  ;;  %1790 = vmatpush3.msra.mxu1 %v759_v25  ;;  %v744_v59 = vld [vmem:[#allocation9 + $0x200] sm:$0xff] }
  0x95   : > { %1747 = vmatprep.subr.mxu0 %v736_v60  ;;  %1791 = vmatprep.subr.mxu1 %v774_v27  ;;  %v2598_v60 = vld [vmem:[#allocation9 + $0x478] sm:$0xff]  ;;  %v805_v27 = vld [vmem:[#allocation9 + $0x3e8] sm:$0xff] }
  0x96   : > { %1748 = vmatpush3.msra.mxu0 %v720_v61  ;;  %1792 = vmatpush3.msra.mxu1 %v758_v29  ;;  %v1643_v61 = vld [vmem:[%s2848_s4] ss:$0 sm:$0xff] }
  0x97   : > { %1749 = vmatprep.subr.mxu0 %v735_v3  ;;  %1793 = vmatprep.subr.mxu1 %v773_v31  ;;  %v789_v31 = vld [vmem:[#allocation9 + $0x368] sm:$0xff] }
  0x98   : > { %1750 = vmatpush3.msra.mxu0 %v719_v5  ;;  %1794 = vmatpush3.msra.mxu1 %v757_v32  ;;  %v804_v32 = vld [vmem:[#allocation9 + $0x3e0] sm:$0xff] }
  0x99   : > { %1751 = vmatprep.subr.mxu0 %v734_v7  ;;  %1795 = vmatprep.subr.mxu1 %v772_v34  ;;  %v803_v34 = vld [vmem:[#allocation9 + $0x3d8] sm:$0xff] }
  0x9a   : > { %1752 = vmatpush3.msra.mxu0 %v718_v9  ;;  %1796 = vmatpush3.msra.mxu1 %v756_v35  ;;  %v787_v35 = vld [vmem:[#allocation9 + $0x358] sm:$0xff] }
  0x9b   : > { %1753 = vmatprep.subr.mxu0 %v733_v11  ;;  %1797 = vmatprep.subr.mxu1 %v771_v36 }
  0x9c   : > { %1754 = vmatpush3.msra.mxu0 %v717_v13  ;;  %1798 = vmatpush3.msra.mxu1 %v755_v37  ;;  %v802_v37 = vld [vmem:[#allocation9 + $0x3d0] sm:$0xff] }
  0x9d   : > { %1755 = vmatprep.subr.mxu0 %v732_v16  ;;  %1799 = vmatprep.subr.mxu1 %v770_v38 }
  0x9e   : > { %1756 = vmatpush3.msra.mxu0 %v716_v18  ;;  %1800 = vmatpush3.msra.mxu1 %v754_v39  ;;  %v786_v39 = vld [vmem:[#allocation9 + $0x350] sm:$0xff] }
  0x9f   : > { %1757 = vmatprep.subr.mxu0 %v731_v19  ;;  %1801 = vmatprep.subr.mxu1 %v769_v40  ;;  %v801_v40 = vld [vmem:[#allocation9 + $0x3c8] sm:$0xff] }
  0xa0   : > { %1758 = vmatpush3.msra.mxu0 %v715_v20  ;;  %1802 = vmatpush3.msra.mxu1 %v753_v41  ;;  %v791_v20 = vld [vmem:[#allocation9 + $0x378] sm:$0xff] }
  0xa1   : > { %1759 = vmatprep.subr.mxu0 %v730_v21  ;;  %1803 = vmatprep.subr.mxu1 %v768_v42  ;;  %v785_v42 = vld [vmem:[#allocation9 + $0x348] sm:$0xff] }
  0xa2   : > { %1760 = vmatpush3.msra.mxu0 %v714_v22  ;;  %1804 = vmatpush3.msra.mxu1 %v752_v43  ;;  %v806_v22 = vld [vmem:[#allocation9 + $0x3f0] sm:$0xff] }
  0xa3   : > { %1761 = vmatprep.subr.mxu0 %v729_v24  ;;  %1805 = vmatprep.subr.mxu1 %v767_v44  ;;  %v800_v44 = vld [vmem:[#allocation9 + $0x3c0] sm:$0xff] }
  0xa4   : > { %1762 = vmatpush3.msra.mxu0 %v713_v26  ;;  %1806 = vmatpush3.msra.mxu1 %v751_v45  ;;  %v790_v26 = vld [vmem:[#allocation9 + $0x370] sm:$0xff]  ;;  %v784_v45 = vld [vmem:[#allocation9 + $0x340] sm:$0xff] }
  0xa5   : > { %1763 = vmatprep.subr.mxu0 %v728_v28  ;;  %1807 = vmatprep.subr.mxu1 %v766_v46  ;;  %v799_v46 = vld [vmem:[#allocation9 + $0x3b8] sm:$0xff] }
  0xa6   : > { %1764 = vmatpush3.msra.mxu0 %v712_v30  ;;  %1808 = vmatpush3.msra.mxu1 %v750_v47  ;;  %v783_v47 = vld [vmem:[#allocation9 + $0x338] sm:$0xff] }
  0xa7   : > { %1845 = vmatprep.subr.mxu0 %v807_v33  ;;  %1809 = vmatprep.subr.mxu1 %v765_v48  ;;  %v788_v33 = vld [vmem:[#allocation9 + $0x360] sm:$0xff] }
  0xa8   : > { %1810 = vmatpush3.msra.mxu1 %v749_v49  ;;  %v798_v49 = vld [vmem:[#allocation9 + $0x3b0] sm:$0xff] }
  0xa9   : > { %1811 = vmatprep.subr.mxu1 %v764_v50 }
  0xaa   : > { %1812 = vmatpush3.msra.mxu1 %v748_v51  ;;  %v782_v51 = vld [vmem:[#allocation9 + $0x330] sm:$0xff] }
  0xab   : > { %1813 = vmatprep.subr.mxu1 %v763_v52  ;;  %v797_v52 = vld [vmem:[#allocation9 + $0x3a8] sm:$0xff] }
  0xac   : > { %1814 = vmatpush3.msra.mxu1 %v747_v53 }
  0xad   : > { %1815 = vmatprep.subr.mxu1 %v762_v54  ;;  %v781_v54 = vld [vmem:[#allocation9 + $0x328] sm:$0xff] }
  0xae   : > { %1816 = vmatpush3.msra.mxu1 %v746_v55 }
  0xaf   : > { %1817 = vmatprep.subr.mxu1 %v761_v56  ;;  %v796_v56 = vld [vmem:[#allocation9 + $0x3a0] sm:$0xff] }
  0xb0   : > { %1818 = vmatpush3.msra.mxu1 %v745_v57  ;;  %v780_v57 = vld [vmem:[#allocation9 + $0x320] sm:$0xff] }
  0xb1   : > { %1819 = vmatprep.subr.mxu1 %v760_v58  ;;  %v795_v58 = vld [vmem:[#allocation9 + $0x398] sm:$0xff] }
  0xb2   : > { %1820 = vmatpush3.msra.mxu1 %v744_v59  ;;  %v779_v59 = vld [vmem:[#allocation9 + $0x318] sm:$0xff] }
  0xb3   : > { %1993 = vmatprep.subr.mxu1 %v2598_v60 }
 0x147   : > { %v1983_v62 = vpop.f32.mrf.mxu0 }
 0x148   : > { %v388_v63 = vadd.f32 %v1983_v62, %v1643_v61  ;;  %v794_v62 = vld [vmem:[#allocation9 + $0x390] sm:$0xff] }
 0x149   : > { %v382_v0 = vpop.f32.mrf.mxu0 }
 0x14a   : > { %v2604_v1 = vmax.f32 %v388_v63, 0.0  ;;  %v383_v2 = vadd.f32 %v1643_v61, %v382_v0  ;;  %v778_v0 = vld [vmem:[#allocation9 + $0x310] sm:$0xff] }
 0x14b   : > { %v1986_v3 = vpop.f32.mrf.mxu0 }
 0x14c   : > { %456 = vst [vmem:[#allocation2 + $0x21] sm:$0xff] %v2604_v1  ;;  %v2607_v4 = vmax.f32 %v383_v2, 0.0  ;;  %v398_v5 = vadd.f32 %v1986_v3, %v1643_v61  ;;  %v793_v2 = vld [vmem:[#allocation9 + $0x388] sm:$0xff] }
 0x14d   : > { %v392_v6 = vpop.f32.mrf.mxu0  ;;  %v777_v3 = vld [vmem:[#allocation9 + $0x308] sm:$0xff] }
 0x14e   : > { %455 = vst [vmem:[#allocation2 + $0x11] sm:$0xff] %v2607_v4  ;;  %v2610_v7 = vmax.f32 %v398_v5, 0.0  ;;  %v393_v8 = vadd.f32 %v1643_v61, %v392_v6  ;;  %898 = vmatprep.mubr.f32.mxu1 %v2607_v4  ;;  %v822_v6 = vld [vmem:[#allocation9 + $0x470] sm:$0xff] }
 0x14f   : > { %v1989_v9 = vpop.f32.mrf.mxu0 }
 0x150   : > { %458 = vst [vmem:[#allocation2 + $0x41] sm:$0xff] %v2610_v7  ;;  %v2614_v10 = vmax.f32 %v393_v8, 0.0  ;;  %v408_v11 = vadd.f32 %v1989_v9, %v1643_v61  ;;  %v792_v8 = vld [vmem:[#allocation9 + $0x380] sm:$0xff] }
 0x151   : > { %v402_v12 = vpop.f32.mrf.mxu0  ;;  %v776_v9 = vld [vmem:[#allocation9 + $0x300] sm:$0xff] }
 0x152   : > { %457 = vst [vmem:[#allocation2 + $0x31] sm:$0xff] %v2614_v10  ;;  %v2617_v13 = vmax.f32 %v408_v11, 0.0  ;;  %v403_v14 = vadd.f32 %v1643_v61, %v402_v12  ;;  %v821_v11 = vld [vmem:[#allocation9 + $0x468] sm:$0xff]  ;;  %v818_v12 = vld [vmem:[#allocation9 + $0x450] sm:$0xff] }
 0x153   : > { %v1992_v15 = vpop.f32.mrf.mxu0  ;;  %v2626_v25 = vld [vmem:[#allocation2 + $0x20] sm:$0xff] }
 0x154   : > { %460 = vst [vmem:[#allocation2 + $0x61] sm:$0xff] %v2617_v13  ;;  %v2620_v16 = vmax.f32 %v403_v14, 0.0  ;;  %v418_v18 = vadd.f32 %v1992_v15, %v1643_v61  ;;  %v2642_v36 = vld [vmem:[#allocation2 + $0x22] sm:$0xff]  ;;  %v814_v15 = vld [vmem:[#allocation9 + $0x430] sm:$0xff] }
 0x155   : > { %v511_v19 = vld [vmem:[#allocation2 + $0x10] sm:$0xff]  ;;  %v412_v21 = vpop.f32.mrf.mxu0  ;;  %v816_v14 = vld [vmem:[#allocation9 + $0x440] sm:$0xff] }
 0x156   : > { %998 = vmatprep.mubr.f32.mxu0 %v511_v19  ;;  %459 = vst [vmem:[#allocation2 + $0x51] sm:$0xff] %v2620_v16  ;;  %899 = vmatmul.mubr.f32.gmra.mxu1 %v511_v19  ;;  %v2623_v23 = vmax.f32 %v418_v18, 0.0  ;;  %v413_v24 = vadd.f32 %v1643_v61, %v412_v21  ;;  %v2635_v30 = vld [vmem:[#allocation2 + $0x12] sm:$0xff] }
 0x157   : > { %999 = vmatmul.mubr.f32.vlgmr.msra.gmra.mxu0 %v495_v17  ;;  %903 = vmatprep.mubr.f32.mxu1 %v2604_v1  ;;  %v2646_v38 = vld [vmem:[#allocation2 + $0x40] sm:$0xff]  ;;  %v810_v18 = vld [vmem:[#allocation9 + $0x410] sm:$0xff] }
 0x158   : > { %1003 = vmatprep.mubr.f32.mxu0 %v2626_v25  ;;  %1846 = vmatpush3.msra.mxu0 %v791_v20  ;;  %462 = vst [vmem:[#allocation2 + $0x81] sm:$0xff] %v2623_v23  ;;  %v2630_v28 = vmax.f32 %v413_v24, 0.0  ;;  %v2658_v48 = vld [vmem:[#allocation2 + $0x42] sm:$0xff]  ;;  %v583_v21 = vld [vmem:[#allocation2 + $0x91] sm:$0xff] }
 0x159   : > { %1847 = vmatprep.subr.mxu0 %v806_v22  ;;  %v2632_v29 = vld [vmem:[#allocation2 + $0x30] sm:$0xff]  ;;  %v812_v17 = vld [vmem:[#allocation9 + $0x420] sm:$0xff]  ;;  %v1377_v24 = vld [vmem:[#allocation10 + $0x78] sm:$0xff] }
 0x15a   : > { %1848 = vmatpush3.msra.mxu0 %v790_v26  ;;  %904 = vmatmul.mubr.f32.gmra.mxu1 %v2626_v25  ;;  %461 = vst [vmem:[#allocation2 + $0x71] sm:$0xff] %v2630_v28  ;;  %v2652_v43 = vld [vmem:[#allocation2 + $0x32] sm:$0xff]  ;;  %v808_v20 = vld [vmem:[#allocation9 + $0x400] sm:$0xff]  ;;  %v1375_v26 = vld [vmem:[#allocation10 + $0x68] sm:$0xff] }
 0x15b   : > { %1004 = vmatmul.mubr.f32.gmra.mxu0 %v2635_v30  ;;  %1849 = vmatprep.subr.mxu0 %v805_v27  ;;  %v2662_v50 = vld [vmem:[#allocation2 + $0x60] sm:$0xff]  ;;  %v567_v22 = vld [vmem:[#allocation2 + $0x90] sm:$0xff] }
 0x15c   : > { %908 = vmatprep.mubr.f32.mxu1 %v2614_v10  ;;  %1008 = vmatprep.mubr.f32.mxu0 %v2632_v29  ;;  %v2674_v61 = vld [vmem:[#allocation2 + $0x62] sm:$0xff] }
 0x15d   : > { %1850 = vmatpush3.msra.mxu0 %v789_v31  ;;  %v2650_v41 = vld [vmem:[#allocation2 + $0x50] sm:$0xff]  ;;  %v1374_v27 = vld [vmem:[#allocation10 + $0x60] sm:$0xff] }
 0x15e   : > { %1851 = vmatprep.subr.mxu0 %v804_v32  ;;  %909 = vmatmul.mubr.f32.gmra.mxu1 %v2632_v29  ;;  %v2668_v55 = vld [vmem:[#allocation2 + $0x52] sm:$0xff]  ;;  %v1370_v31 = vld [vmem:[#allocation10 + $0x40] sm:$0xff] }
 0x15f   : > { %1852 = vmatpush3.msra.mxu0 %v788_v33  ;;  %913 = vmatprep.mubr.f32.mxu1 %v2610_v7  ;;  %v2678_v63 = vld [vmem:[#allocation2 + $0x80] sm:$0xff]  ;;  %v1369_v32 = vld [vmem:[#allocation10 + $0x38] sm:$0xff]  ;;  %v1368_v33 = vld [vmem:[#allocation10 + $0x30] sm:$0xff] }
 0x160   : > { %1009 = vmatmul.mubr.f32.gmra.mxu0 %v2642_v36  ;;  %1853 = vmatprep.subr.mxu0 %v803_v34  ;;  %v550_v19 = vld [vmem:[#allocation2 + $0x82] sm:$0xff] }
 0x161   : > { %1013 = vmatprep.mubr.f32.mxu0 %v2646_v38  ;;  %1854 = vmatpush3.msra.mxu0 %v787_v35  ;;  %v2666_v53 = vld [vmem:[#allocation2 + $0x70] sm:$0xff]  ;;  %v1367_v34 = vld [vmem:[#allocation10 + $0x28] sm:$0xff]  ;;  %v1366_v35 = vld [vmem:[#allocation10 + $0x20] sm:$0xff] }
 0x162   : > { %1855 = vmatprep.subr.mxu0 %v802_v37  ;;  %914 = vmatmul.mubr.f32.gmra.mxu1 %v2646_v38  ;;  %v2682_v5 = vld [vmem:[#allocation2 + $0x72] sm:$0xff] }
 0x163   : > { %1856 = vmatpush3.msra.mxu0 %v786_v39  ;;  %918 = vmatprep.mubr.f32.mxu1 %v2620_v16  ;;  %v1364_v37 = vld [vmem:[#allocation10 + $0x10] sm:$0xff]  ;;  %v1362_v39 = vld [vmem:[#allocation10] sm:$0xff] }
 0x164   : > { %1014 = vmatmul.mubr.f32.gmra.mxu0 %v2652_v43  ;;  %1857 = vmatprep.subr.mxu0 %v801_v40  ;;  %v1709_v40 = vpop.f32.mrf.mxu1 }
 0x165   : > { %1018 = vmatprep.mubr.f32.mxu0 %v2650_v41  ;;  %1858 = vmatpush3.msra.mxu0 %v785_v42 }
 0x166   : > { %1859 = vmatprep.subr.mxu0 %v800_v44  ;;  %919 = vmatmul.mubr.f32.gmra.mxu1 %v2650_v41 }
 0x167   : > { %1860 = vmatpush3.msra.mxu0 %v784_v45  ;;  %923 = vmatprep.mubr.f32.mxu1 %v2617_v13 }
 0x168   : > { %1019 = vmatmul.mubr.f32.gmra.mxu0 %v2658_v48  ;;  %1861 = vmatprep.subr.mxu0 %v799_v46 }
 0x169   : > { %1023 = vmatprep.mubr.f32.mxu0 %v2662_v50  ;;  %1862 = vmatpush3.msra.mxu0 %v783_v47 }
 0x16a   : > { %1863 = vmatprep.subr.mxu0 %v798_v49  ;;  %924 = vmatmul.mubr.f32.gmra.mxu1 %v2662_v50 }
 0x16b   : > { %1864 = vmatpush3.msra.mxu0 %v782_v51  ;;  %928 = vmatprep.mubr.f32.mxu1 %v2630_v28 }
 0x16c   : > { %1024 = vmatmul.mubr.f32.gmra.mxu0 %v2668_v55  ;;  %1865 = vmatprep.subr.mxu0 %v797_v52 }
 0x16d   : > { %1028 = vmatprep.mubr.f32.mxu0 %v2666_v53  ;;  %1866 = vmatpush3.msra.mxu0 %v781_v54 }
 0x16e   : > { %1867 = vmatprep.subr.mxu0 %v796_v56  ;;  %929 = vmatmul.mubr.f32.gmra.mxu1 %v2666_v53 }
 0x16f   : > { %1868 = vmatpush3.msra.mxu0 %v780_v57  ;;  %1103 = vmatprep.mubr.f32.mxu1 %v2635_v30  ;;  %v1371_v30 = vld [vmem:[#allocation10 + $0x48] sm:$0xff] }
 0x170   : > { %1029 = vmatmul.mubr.f32.gmra.mxu0 %v2674_v61  ;;  %1869 = vmatprep.subr.mxu0 %v795_v58 }
 0x171   : > { %1033 = vmatprep.mubr.f32.mxu0 %v2678_v63  ;;  %1870 = vmatpush3.msra.mxu0 %v779_v59 }
 0x172   : > { %1871 = vmatprep.subr.mxu0 %v794_v62  ;;  %1104 = vmatmul.mubr.f32.vlgmr.msra.gmra.mxu1 %v2607_v4  ;;  %v820_v4 = vld [vmem:[#allocation9 + $0x460] sm:$0xff] }
 0x173   : > { %1872 = vmatpush3.msra.mxu0 %v778_v0  ;;  %1994 = vmatpush3.msra.mxu1 %v2598_v60  ;;  %v819_v60 = vld [vmem:[#allocation9 + $0x458] sm:$0xff] }
 0x174   : > { %1034 = vmatmul.mubr.f32.gmra.mxu0 %v2682_v5  ;;  %1873 = vmatprep.subr.mxu0 %v793_v2 }
 0x175   : > { %1108 = vmatprep.mubr.f32.mxu1 %v2642_v36  ;;  %1874 = vmatpush3.msra.mxu0 %v777_v3 }
 0x176   : > { %1208 = vmatprep.mubr.f32.mxu0 %v2604_v1  ;;  %1995 = vmatprep.subr.mxu1 %v822_v6 }
 0x177   : > { %1875 = vmatprep.subr.mxu0 %v792_v8  ;;  %1996 = vmatpush3.msra.mxu1 %v822_v6 }
 0x178   : > { %1876 = vmatpush3.msra.mxu0 %v776_v9  ;;  %1997 = vmatprep.subr.mxu1 %v821_v11 }
 0x179   : > { %1109 = vmatmul.mubr.f32.gmra.mxu1 %v2604_v1  ;;  %1209 = vmatmul.mubr.f32.vlgmr.msra.gmra.mxu0 %v2626_v25  ;;  %v817_v1 = vld [vmem:[#allocation9 + $0x448] sm:$0xff]  ;;  %v1376_v25 = vld [vmem:[#allocation10 + $0x70] sm:$0xff] }
 0x17a   : > { %1998 = vmatpush3.msra.mxu1 %v821_v11  ;;  %1113 = vmatprep.mubr.f32.mxu1 %v2652_v43 }
 0x17b   : > { %1213 = vmatprep.mubr.f32.mxu0 %v2614_v10  ;;  %1999 = vmatprep.subr.mxu1 %v820_v4 }
 0x17c   : > { %2000 = vmatpush3.msra.mxu1 %v820_v4  ;;  %2037 = vmatprep.subr.mxu0 %v1377_v24 }
 0x17d   : > { %2001 = vmatprep.subr.mxu1 %v819_v60  ;;  %1114 = vmatmul.mubr.f32.gmra.mxu1 %v2614_v10  ;;  %v815_v10 = vld [vmem:[#allocation9 + $0x438] sm:$0xff] }
 0x17e   : > { %1214 = vmatmul.mubr.f32.gmra.mxu0 %v2632_v29  ;;  %2002 = vmatpush3.msra.mxu1 %v819_v60  ;;  %v1372_v29 = vld [vmem:[#allocation10 + $0x50] sm:$0xff] }
 0x17f   : > { %1118 = vmatprep.mubr.f32.mxu1 %v2658_v48  ;;  %1218 = vmatprep.mubr.f32.mxu0 %v2610_v7 }
 0x180   : > { %2003 = vmatprep.subr.mxu1 %v818_v12  ;;  %2038 = vmatpush3.msra.mxu0 %v1377_v24 }
 0x181   : > { %2004 = vmatpush3.msra.mxu1 %v818_v12  ;;  %2039 = vmatprep.subr.mxu0 %v1376_v25 }
 0x182   : > { %2005 = vmatprep.subr.mxu1 %v817_v1  ;;  %1119 = vmatmul.mubr.f32.gmra.mxu1 %v2610_v7  ;;  %v813_v7 = vld [vmem:[#allocation9 + $0x428] sm:$0xff] }
 0x183   : > { %1219 = vmatmul.mubr.f32.gmra.mxu0 %v2646_v38  ;;  %2006 = vmatpush3.msra.mxu1 %v817_v1  ;;  %v1363_v38 = vld [vmem:[#allocation10 + $0x8] sm:$0xff] }
 0x184   : > { %1123 = vmatprep.mubr.f32.mxu1 %v2668_v55  ;;  %1223 = vmatprep.mubr.f32.mxu0 %v2620_v16 }
 0x185   : > { %2007 = vmatprep.subr.mxu1 %v816_v14  ;;  %2040 = vmatpush3.msra.mxu0 %v1376_v25 }
 0x186   : > { %2008 = vmatpush3.msra.mxu1 %v816_v14  ;;  %2041 = vmatprep.subr.mxu0 %v1375_v26 }
 0x187   : > { %2009 = vmatprep.subr.mxu1 %v815_v10  ;;  %1124 = vmatmul.mubr.f32.gmra.mxu1 %v2620_v16  ;;  %v811_v16 = vld [vmem:[#allocation9 + $0x418] sm:$0xff] }
 0x188   : > { %1224 = vmatmul.mubr.f32.gmra.mxu0 %v2650_v41  ;;  %2010 = vmatpush3.msra.mxu1 %v815_v10  ;;  %v1710_v41 = vpop.f32.mrf.mxu1 }
 0x189   : > { %1128 = vmatprep.mubr.f32.mxu1 %v2674_v61  ;;  %1228 = vmatprep.mubr.f32.mxu0 %v2617_v13 }
 0x18a   : > { %2011 = vmatprep.subr.mxu1 %v814_v15  ;;  %2042 = vmatpush3.msra.mxu0 %v1375_v26 }
 0x18b   : > { %2012 = vmatpush3.msra.mxu1 %v814_v15  ;;  %2043 = vmatprep.subr.mxu0 %v1374_v27 }
 0x18c   : > { %2013 = vmatprep.subr.mxu1 %v813_v7  ;;  %1129 = vmatmul.mubr.f32.gmra.mxu1 %v2617_v13  ;;  %v809_v13 = vld [vmem:[#allocation9 + $0x408] sm:$0xff] }
 0x18d   : > { %1229 = vmatmul.mubr.f32.gmra.mxu0 %v2662_v50  ;;  %2014 = vmatpush3.msra.mxu1 %v813_v7 }
 0x18e   : > { %1133 = vmatprep.mubr.f32.mxu1 %v2682_v5  ;;  %1233 = vmatprep.mubr.f32.mxu0 %v2630_v28 }
 0x18f   : > { %2015 = vmatprep.subr.mxu1 %v812_v17  ;;  %2044 = vmatpush3.msra.mxu0 %v1374_v27 }
 0x190   : > { %2016 = vmatpush3.msra.mxu1 %v812_v17 }
 0x191   : > { %2017 = vmatprep.subr.mxu1 %v811_v16  ;;  %1134 = vmatmul.mubr.f32.gmra.mxu1 %v2630_v28  ;;  %v1373_v28 = vld [vmem:[#allocation10 + $0x58] sm:$0xff] }
 0x192   : > { %1234 = vmatmul.mubr.f32.gmra.mxu0 %v2666_v53  ;;  %2018 = vmatpush3.msra.mxu1 %v811_v16 }
 0x193   : > { %1138 = vmatprep.mubr.f32.mxu1 %v550_v19  ;;  %1238 = vmatprep.mubr.f32.mxu0 %v2623_v23 }
 0x194   : > { %2019 = vmatprep.subr.mxu1 %v810_v18  ;;  %2045 = vmatprep.subr.mxu0 %v1373_v28 }
 0x195   : > { %2020 = vmatpush3.msra.mxu1 %v810_v18  ;;  %2046 = vmatpush3.msra.mxu0 %v1373_v28 }
 0x196   : > { %2021 = vmatprep.subr.mxu1 %v809_v13  ;;  %1139 = vmatmul.mubr.f32.gmra.mxu1 %v2623_v23  ;;  %v599_v23 = vld [vmem:[#allocation2 + $0x92] sm:$0xff] }
 0x197   : > { %1239 = vmatmul.mubr.f32.gmra.mxu0 %v2678_v63  ;;  %2022 = vmatpush3.msra.mxu1 %v809_v13 }
 0x198   : > { %2023 = vmatprep.subr.mxu1 %v808_v20  ;;  %2025 = vmatprep.mubr.f32.mxu1 %v2642_v36  ;;  %v1365_v36 = vld [vmem:[#allocation10 + $0x18] sm:$0xff] }
 0x199   : > { %2024 = vmatpush3.msra.mxu1 %v808_v20  ;;  %1243 = vmatprep.mubr.f32.mxu0 %v583_v21 }
 0x19a   : > { %2026 = vmatmul.mubr.f32.vlgmr.msra.gmra.mxu1 %v2652_v43  ;;  %2081 = vmatprep.subr.mxu1 %v1377_v24 }
 0x19b   : > { %1244 = vmatmul.mubr.f32.gmra.mxu0 %v567_v22  ;;  %2028 = vmatprep.mubr.f32.mxu1 %v2658_v48 }
 0x19c   : > { %2097 = vmatpush3.msra.mxu1 %v1377_v24  ;;  %2047 = vmatprep.subr.mxu0 %v1372_v29 }
 0x19d   : > { %2082 = vmatprep.subr.mxu1 %v1376_v25  ;;  %2048 = vmatpush3.msra.mxu0 %v1372_v29 }
 0x19e   : > { %2029 = vmatmul.mubr.f32.gmra.mxu1 %v2668_v55  ;;  %2049 = vmatprep.subr.mxu0 %v1371_v30 }
 0x19f   : > { %2031 = vmatprep.mubr.f32.mxu1 %v2674_v61  ;;  %2098 = vmatpush3.msra.mxu1 %v1376_v25 }
 0x1a0   : > { %2083 = vmatprep.subr.mxu1 %v1375_v26  ;;  %2050 = vmatpush3.msra.mxu0 %v1371_v30 }
 0x1a1   : > { %2099 = vmatpush3.msra.mxu1 %v1375_v26  ;;  %2051 = vmatprep.subr.mxu0 %v1370_v31 }
 0x1a2   : > { %2032 = vmatmul.mubr.f32.gmra.mxu1 %v2682_v5  ;;  %2084 = vmatprep.subr.mxu1 %v1374_v27 }
 0x1a3   : > { %2034 = vmatprep.mubr.f32.mxu1 %v550_v19  ;;  %2100 = vmatpush3.msra.mxu1 %v1374_v27 }
 0x1a4   : > { %2085 = vmatprep.subr.mxu1 %v1373_v28  ;;  %2052 = vmatpush3.msra.mxu0 %v1370_v31 }
 0x1a5   : > { %2101 = vmatpush3.msra.mxu1 %v1373_v28  ;;  %2053 = vmatprep.subr.mxu0 %v1369_v32 }
 0x1a6   : > { %2035 = vmatmul.mubr.f32.gmra.mxu1 %v599_v23  ;;  %2086 = vmatprep.subr.mxu1 %v1372_v29 }
 0x1a7   : > { %2102 = vmatpush3.msra.mxu1 %v1372_v29  ;;  %2054 = vmatpush3.msra.mxu0 %v1369_v32 }
 0x1a8   : > { %2087 = vmatprep.subr.mxu1 %v1371_v30  ;;  %2055 = vmatprep.subr.mxu0 %v1368_v33 }
 0x1a9   : > { %2103 = vmatpush3.msra.mxu1 %v1371_v30  ;;  %2056 = vmatpush3.msra.mxu0 %v1368_v33 }
 0x1aa   : > { %2088 = vmatprep.subr.mxu1 %v1370_v31  ;;  %2057 = vmatprep.subr.mxu0 %v1367_v34 }
 0x1ab   : > { %2104 = vmatpush3.msra.mxu1 %v1370_v31  ;;  %2058 = vmatpush3.msra.mxu0 %v1367_v34  ;;  %v1711_v31 = vadd.f32 %v1710_v41, %v1709_v40 }
 0x1ac   : > { %2089 = vmatprep.subr.mxu1 %v1369_v32  ;;  %2059 = vmatprep.subr.mxu0 %v1366_v35 }
 0x1ad   : > { %2105 = vmatpush3.msra.mxu1 %v1369_v32  ;;  %2060 = vmatpush3.msra.mxu0 %v1366_v35 }
 0x1ae   : > { %2090 = vmatprep.subr.mxu1 %v1368_v33  ;;  %2061 = vmatprep.subr.mxu0 %v1365_v36 }
 0x1af   : > { %2106 = vmatpush3.msra.mxu1 %v1368_v33  ;;  %2062 = vmatpush3.msra.mxu0 %v1365_v36  ;;  %v2746_v33 = vld [vmem:[%s2848_s4 + $0x1] ss:$0 sm:$0xff] }
 0x1b0   : > { %2091 = vmatprep.subr.mxu1 %v1367_v34  ;;  %2063 = vmatprep.subr.mxu0 %v1364_v37  ;;  %v896_v40 = vadd.f32 %v1711_v31, %v2746_v33 }
 0x1b1   : > { %2107 = vmatpush3.msra.mxu1 %v1367_v34  ;;  %2064 = vmatpush3.msra.mxu0 %v1364_v37 }
 0x1b2   : > { %2092 = vmatprep.subr.mxu1 %v1366_v35  ;;  %2065 = vmatprep.subr.mxu0 %v1363_v38 }
 0x1b3   : > { %2108 = vmatpush3.msra.mxu1 %v1366_v35  ;;  %2066 = vmatpush3.msra.mxu0 %v1363_v38 }
 0x1b4   : > { %2093 = vmatprep.subr.mxu1 %v1365_v36  ;;  %2067 = vmatprep.subr.mxu0 %v1362_v39 }
 0x1b5   : > { %2109 = vmatpush3.msra.mxu1 %v1365_v36  ;;  %2068 = vmatpush3.msra.mxu0 %v1362_v39 }
 0x1b6   : > { %2094 = vmatprep.subr.mxu1 %v1364_v37 }
 0x1b7   : > { %2110 = vmatpush3.msra.mxu1 %v1364_v37 }
 0x1b8   : > { %2095 = vmatprep.subr.mxu1 %v1363_v38 }
 0x1b9   : > { %2111 = vmatpush3.msra.mxu1 %v1363_v38 }
 0x1ba   : > { %2096 = vmatprep.subr.mxu1 %v1362_v39 }
 0x1bb   : > { %2112 = vmatpush3.msra.mxu1 %v1362_v39 }
 0x216   : > { %v1712_v42 = vpop.f32.mrf.mxu1 }
 0x217   : > { %v1765_v43 = vpop.f32.mrf.mxu0 }
 0x218   : > { %v1713_v44 = vpop.f32.mrf.mxu1 }
 0x219   : > { %v1766_v45 = vpop.f32.mrf.mxu0  ;;  %v1714_v30 = vadd.f32 %v1713_v44, %v1712_v42 }
 0x21a   : > { %v1715_v46 = vpop.f32.mrf.mxu1  ;;  %v1767_v37 = vadd.f32 %v1766_v45, %v1765_v43 }
 0x21b   : > { %v1768_v47 = vpop.f32.mrf.mxu0  ;;  %v901_v39 = vadd.f32 %v1714_v30, %v2746_v33 }
 0x21c   : > { %v1716_v48 = vpop.f32.mrf.mxu1 }
 0x21d   : > { %v1769_v49 = vpop.f32.mrf.mxu0  ;;  %v1717_v34 = vadd.f32 %v1716_v48, %v1715_v46  ;;  %v1001_v48 = vadd.f32 %v1767_v37, %v896_v40 }
 0x21e   : > { %v1718_v50 = vpop.f32.mrf.mxu1  ;;  %v1770_v35 = vadd.f32 %v1769_v49, %v1768_v47 }
 0x220   : > { %v1771_v51 = vpop.f32.mrf.mxu0  ;;  %v1719_v52 = vpop.f32.mrf.mxu1 }
 0x222   : > { %v1772_v53 = vpop.f32.mrf.mxu0  ;;  %v1721_v54 = vpop.f32.mrf.mxu1 }
 0x224   : > { %v1774_v55 = vpop.f32.mrf.mxu0  ;;  %v1722_v56 = vpop.f32.mrf.mxu1 }
 0x225   : > { %v1723_v41 = vadd.f32 %v1722_v56, %v1721_v54 }
 0x226   : > { %v1775_v57 = vpop.f32.mrf.mxu0  ;;  %v1724_v58 = vpop.f32.mrf.mxu1 }
 0x227   : > { %v916_v54 = vadd.f32 %v1723_v41, %v2746_v33 }
 0x228   : > { %v1777_v59 = vpop.f32.mrf.mxu0  ;;  %v1725_v61 = vpop.f32.mrf.mxu1 }
 0x229   : > { %v1726_v43 = vadd.f32 %v1725_v61, %v1724_v58 }
 0x22a   : > { %v1778_v62 = vpop.f32.mrf.mxu0  ;;  %v2719_v63 = vpop.f32.mrf.mxu1 }
 0x22b   : > { %v1779_v45 = vadd.f32 %v1778_v62, %v1777_v59 }
 0x22c   : > { %v2721_v0 = vpop.f32.mrf.mxu0  ;;  %v2723_v2 = vpop.f32.mrf.mxu1 }
 0x22e   : > { %v1781_v3 = vpop.f32.mrf.mxu0  ;;  %v2725_v5 = vpop.f32.mrf.mxu1 }
 0x22f   : > { %v1782_v56 = vadd.f32 %v1781_v3, %v2721_v0 }
 0x230   : > { %v2727_v6 = vpop.f32.mrf.mxu0  ;;  %v2729_v8 = vpop.f32.mrf.mxu1 }
 0x231   : > { %2868 = vst [vmem:[#allocation17_spill] sm:$0xff] %v2727_v6  ;;  %v1006_v6 = vadd.f32 %v1770_v35, %v901_v39  ;;  %v1732_v58 = vadd.f32 %v2729_v8, %v2725_v5 }
 0x232   : > { %v2731_v9 = vpop.f32.mrf.mxu0  ;;  %v1821_v11 = vpop.f32.mrf.mxu1 }
 0x233   : > { %2869 = vst [vmem:[#allocation18_spill] sm:$0xff] %v2731_v9  ;;  %v1773_v9 = vadd.f32 %v1772_v53, %v1771_v51  ;;  %v931_v8 = vadd.f32 %v1732_v58, %v2746_v33 }
 0x234   : > { %v2733_v4 = vpop.f32.mrf.mxu0  ;;  %v1822_v60 = vpop.f32.mrf.mxu1 }
 0x235   : > { %v1823_v44 = vadd.f32 %v1822_v60, %v1821_v11 }
 0x236   : > { %v2735_v12 = vpop.f32.mrf.mxu0 }
 0x237   : > { %2870 = vst [vmem:[#allocation19_spill] sm:$0xff] %v2735_v12  ;;  %v1776_v12 = vadd.f32 %v1775_v57, %v1774_v55  ;;  %v1106_v11 = vadd.f32 %v1823_v44, %v1001_v48 }
 0x239   : > { %v1824_v1 = vpop.f32.mrf.mxu1  ;;  %v1877_v14 = vpop.f32.mrf.mxu0 }
 0x23b   : > { %v1825_v10 = vpop.f32.mrf.mxu1  ;;  %v1878_v15 = vpop.f32.mrf.mxu0 }
 0x23c   : > { %v1879_v49 = vadd.f32 %v1878_v15, %v1877_v14  ;;  %v921_v14 = vadd.f32 %v1726_v43, %v2746_v33 }
 0x23d   : > { %v1827_v7 = vpop.f32.mrf.mxu1 }
 0x23e   : > { %v1880_v17 = vpop.f32.mrf.mxu0  ;;  %v1211_v15 = vadd.f32 %v1879_v49, %v1106_v11 }
 0x23f   : > { %v1828_v16 = vpop.f32.mrf.mxu1 }
 0x240   : > { %v1881_v18 = vpop.f32.mrf.mxu0  ;;  %v1829_v60 = vadd.f32 %v1828_v16, %v1827_v7 }
 0x241   : > { %v1882_v46 = vadd.f32 %v1881_v18, %v1880_v17  ;;  %v1729_v17 = vadd.f32 %v2723_v2, %v2719_v63 }
 0x242   : > { %v1830_v19 = vpop.f32.mrf.mxu1 }
 0x243   : > { %v1883_v13 = vpop.f32.mrf.mxu0  ;;  %v926_v39 = vadd.f32 %v1729_v17, %v2746_v33 }
 0x244   : > { %v1831_v20 = vpop.f32.mrf.mxu1 }
 0x245   : > { %v1884_v21 = vpop.f32.mrf.mxu0  ;;  %v1832_v53 = vadd.f32 %v1831_v20, %v1830_v19  ;;  %v2875_v20 = vld [vmem:[#allocation19_spill] sm:$0xff] }
 0x247   : > { %v1833_v22 = vpop.f32.mrf.mxu1 }
 0x248   : > { %v1886_v23 = vpop.f32.mrf.mxu0 }
 0x249   : > { %v1834_v24 = vpop.f32.mrf.mxu1 }
 0x24a   : > { %v1887_v25 = vpop.f32.mrf.mxu0  ;;  %v1835_v19 = vadd.f32 %v1834_v24, %v1833_v22 }
 0x24b   : > { %v1888_v59 = vadd.f32 %v1887_v25, %v1886_v23  ;;  %v1788_v23 = vadd.f32 %v2875_v20, %v2733_v4 }
 0x24c   : > { %v1836_v26 = vpop.f32.mrf.mxu1 }
 0x24d   : > { %v2737_v27 = vpop.f32.mrf.mxu0  ;;  %v1036_v44 = vadd.f32 %v1788_v23, %v931_v8  ;;  %v2197_v8 = vld [vmem:[%s2576_s23 + $0x18] sm:$0xff] }
 0x24e   : > { %2871 = vst [vmem:[#allocation20_spill] sm:$0xff] %v2737_v27  ;;  %v1837_v28 = vpop.f32.mrf.mxu1  ;;  %v1720_v27 = vadd.f32 %v1719_v52, %v1718_v50 }
 0x24f   : > { %v2739_v29 = vpop.f32.mrf.mxu0  ;;  %v1838_v3 = vadd.f32 %v1837_v28, %v1836_v26 }
 0x250   : > { %2872 = vst [vmem:[#allocation21_spill] sm:$0xff] %v2739_v29  ;;  %v1826_v29 = vadd.f32 %v1825_v10, %v1824_v1  ;;  %v911_v50 = vadd.f32 %v1720_v27, %v2746_v33  ;;  %v2876_v27 = vld [vmem:[#allocation17_spill] sm:$0xff] }
 0x251   : > { %v2741_v32 = vpop.f32.mrf.mxu1 }
 0x252   : > { %2873 = vst [vmem:[#allocation22_spill] sm:$0xff] %v2741_v32  ;;  %v1892_v36 = vpop.f32.mrf.mxu0  ;;  %v906_v32 = vadd.f32 %v1717_v34, %v2746_v33  ;;  %v1111_v52 = vadd.f32 %v1826_v29, %v1006_v6  ;;  %v1016_v57 = vadd.f32 %v1776_v12, %v911_v50  ;;  %v1885_v6 = vadd.f32 %v1884_v21, %v1883_v13  ;;  %v2877_v29 = vld [vmem:[#allocation18_spill] sm:$0xff] }
 0x253   : > { %v2748_v38 = vpop.f32.mrf.mxu1  ;;  %v1026_v12 = vadd.f32 %v1782_v56, %v921_v14  ;;  %v1785_v30 = vadd.f32 %v2877_v29, %v2876_v27  ;;  %v1645_v14 = vld [vmem:[%s2848_s4 + $0x2] ss:$0 sm:$0xff] }
 0x254   : > { %2874 = vst [vmem:[#allocation23_spill] sm:$0xff] %v2748_v38  ;;  %v1893_v42 = vpop.f32.mrf.mxu0  ;;  %v1011_v51 = vadd.f32 %v1773_v9, %v906_v32  ;;  %v1216_v61 = vadd.f32 %v1882_v46, %v1111_v52  ;;  %v1021_v9 = vadd.f32 %v1779_v45, %v916_v54  ;;  %v1121_v0 = vadd.f32 %v1832_v53, %v1016_v57 }
 0x255   : > { %v1894_v25 = vadd.f32 %v1893_v42, %v1892_v36  ;;  %v2878_v63 = vld [vmem:[#allocation20_spill] sm:$0xff]  ;;  %v1131_v34 = vadd.f32 %v1838_v3, %v1026_v12  ;;  %v1031_v45 = vadd.f32 %v1785_v30, %v926_v39 }
 0x256   : > { %v1842_v47 = vpop.f32.mrf.mxu1  ;;  %v1116_v18 = vadd.f32 %v1829_v60, %v1011_v51  ;;  %v1226_v13 = vadd.f32 %v1888_v59, %v1121_v0  ;;  %v1126_v4 = vadd.f32 %v1835_v19, %v1021_v9  ;;  %v2201_v39 = vld [vmem:[%s2576_s23 + $0x38] sm:$0xff] }
 0x257   : > { %v1895_v38 = vpop.f32.mrf.mxu0  ;;  %v2879_v2 = vld [vmem:[#allocation21_spill] sm:$0xff]  ;;  %v1236_v48 = vadd.f32 %v1894_v25, %v1131_v34 }
 0x258   : > { %v1843_v1 = vpop.f32.mrf.mxu1  ;;  %v1891_v26 = vadd.f32 %v2879_v2, %v2878_v63  ;;  %v1221_v32 = vadd.f32 %v1885_v6, %v1116_v18  ;;  %v2199_v2 = vld [vmem:[%s2576_s23 + $0x28] sm:$0xff]  ;;  %v2200_v34 = vld [vmem:[%s2576_s23 + $0x20] sm:$0xff] }
 0x259   : > { %v1896_v55 = vpop.f32.mrf.mxu0  ;;  %v1844_v22 = vadd.f32 %v1843_v1, %v1842_v47  ;;  %v2880_v36 = vld [vmem:[#allocation22_spill] sm:$0xff] }
 0x25a   : > { %v2027_v62 = vpop.f32.mrf.mxu1  ;;  %v1897_v49 = vadd.f32 %v1896_v55, %v1895_v38  ;;  %v1231_v47 = vadd.f32 %v1891_v26, %v1126_v4 }
 0x25b   : > { %v1898_v10 = vpop.f32.mrf.mxu0  ;;  %v1321_v7 = vadd.f32 %v2027_v62, %v1216_v61  ;;  %v2881_v42 = vld [vmem:[#allocation23_spill] sm:$0xff]  ;;  %v1141_v51 = vadd.f32 %v1844_v22, %v1036_v44 }
 0x25c   : > { %v1315_v16 = vpop.f32.mrf.mxu1  ;;  %v1841_v40 = vadd.f32 %v2881_v42, %v2880_v36 }
 0x25d   : > { %v1316_v5 = vadd.f32 %v1315_v16, %v1211_v15  ;;  %v1899_v28 = vpop.f32.mrf.mxu0  ;;  %v1355_v24 = vmax.f32 %v1321_v7, 0.0  ;;  %v2195_v15 = vld [vmem:[%s2576_s23 + $0x8] sm:$0xff]  ;;  %v2196_v16 = vld [vmem:[%s2576_s23] sm:$0xff] }
 0x25e   : > { %v2030_v21 = vpop.f32.mrf.mxu1  ;;  %v1900_v46 = vadd.f32 %v1899_v28, %v1898_v10  ;;  %v1136_v33 = vadd.f32 %v1841_v40, %v1031_v45  ;;  %v2202_v40 = vld [vmem:[%s2576_s23 + $0x30] sm:$0xff] }
 0x25f   : > { %v1354_v31 = vmax.f32 %v1316_v5, 0.0  ;;  %v1331_v35 = vadd.f32 %v2030_v21, %v1226_v13  ;;  %v2198_v21 = vld [vmem:[%s2576_s23 + $0x10] sm:$0xff] }
 0x260   : > { %v1325_v37 = vpop.f32.mrf.mxu1  ;;  %v1246_v56 = vadd.f32 %v1900_v46, %v1141_v51  ;;  %v1241_v57 = vadd.f32 %v1897_v49, %v1136_v33 }
 0x261   : > { %v1326_v41 = vadd.f32 %v1325_v37, %v1221_v32  ;;  %2069 = vmatprep.mubr.f32.mxu0 %v1354_v31  ;;  %v1357_v52 = vmax.f32 %v1331_v35, 0.0 }
 0x262   : > { %v2033_v43 = vpop.f32.mrf.mxu1  ;;  %2070 = vmatmul.mubr.f32.vlgmr.msra.gmra.mxu0 %v1355_v24 }
 0x263   : > { %v1356_v50 = vmax.f32 %v1326_v41, 0.0  ;;  %v1341_v53 = vadd.f32 %v2033_v43, %v1236_v48 }
 0x264   : > { %v1335_v1 = vpop.f32.mrf.mxu1 }
 0x265   : > { %v1336_v54 = vadd.f32 %v1335_v1, %v1231_v47  ;;  %2072 = vmatprep.mubr.f32.mxu0 %v1356_v50  ;;  %v1359_v58 = vmax.f32 %v1341_v53, 0.0 }
 0x266   : > { %v2036_v11 = vpop.f32.mrf.mxu1  ;;  %2073 = vmatmul.mubr.f32.gmra.mxu0 %v1357_v52 }
 0x267   : > { %v1358_v60 = vmax.f32 %v1336_v54, 0.0  ;;  %v1351_v59 = vadd.f32 %v2036_v11, %v1246_v56 }
 0x268   : > { %v1345_v61 = vpop.f32.mrf.mxu1 }
 0x269   : > { %v1346_v62 = vadd.f32 %v1345_v61, %v1241_v57  ;;  %2075 = vmatprep.mubr.f32.mxu1 %v1358_v60  ;;  %v1361_v55 = vmax.f32 %v1351_v59, 0.0 }
 0x26a   : > { %2076 = vmatmul.mubr.f32.vlgmr.msra.gmra.mxu1 %v1359_v58 }
 0x26b   : > { %v1360_v38 = vmax.f32 %v1346_v62, 0.0 }
 0x26d   : > { %2078 = vmatprep.mubr.f32.mxu1 %v1360_v38 }
 0x26e   : > { %2079 = vmatmul.mubr.f32.gmra.mxu1 %v1361_v55 }
 0x322   : > { %v2071_v9 = vpop.f32.mrf.mxu0 }
 0x323   : > { %v1455_v6 = vadd.f32 %v2071_v9, %v1645_v14 }
 0x324   : > { %v1449_v10 = vpop.f32.mrf.mxu0 }
 0x325   : > { %v1489_v17 = vadd.f32 %v2195_v15, %v1455_v6  ;;  %v1450_v0 = vadd.f32 %v1645_v14, %v1449_v10 }
 0x326   : > { %v2074_v3 = vpop.f32.mrf.mxu0 }
 0x327   : > { %v1497_v7 = vmax.f32 %v1489_v17, 0.0  ;;  %v1488_v12 = vadd.f32 %v2196_v16, %v1450_v0  ;;  %v1465_v18 = vadd.f32 %v2074_v3, %v1645_v14 }
 0x328   : > { %v1459_v19 = vpop.f32.mrf.mxu0 }
 0x329   : > { %1505 = vst [vmem:[%s2778_s13 + $0x8] sm:$0xff] %v1497_v7  ;;  %v1496_v5 = vmax.f32 %v1488_v12, 0.0  ;;  %v1491_v20 = vadd.f32 %v2197_v8, %v1465_v18  ;;  %v1460_v23 = vadd.f32 %v1645_v14, %v1459_v19 }
 0x32a   : > { %v2077_v25 = vpop.f32.mrf.mxu1 }
 0x32b   : > { %1504 = vst [vmem:[%s2778_s13] sm:$0xff] %v1496_v5  ;;  %v1499_v13 = vmax.f32 %v1491_v20, 0.0  ;;  %v1490_v27 = vadd.f32 %v2198_v21, %v1460_v23  ;;  %v1475_v29 = vadd.f32 %v2077_v25, %v1645_v14 }
 0x32c   : > { %v1469_v30 = vpop.f32.mrf.mxu1 }
 0x32d   : > { %1507 = vst [vmem:[%s2778_s13 + $0x18] sm:$0xff] %v1499_v13  ;;  %v1498_v63 = vmax.f32 %v1490_v27, 0.0  ;;  %v1493_v26 = vadd.f32 %v2199_v2, %v1475_v29  ;;  %v1470_v28 = vadd.f32 %v1645_v14, %v1469_v30 }
 0x32e   : > { %v2080_v31 = vpop.f32.mrf.mxu1 }
 0x32f   : > { %1506 = vst [vmem:[%s2778_s13 + $0x10] sm:$0xff] %v1498_v63  ;;  %v1501_v32 = vmax.f32 %v1493_v26, 0.0  ;;  %v1492_v22 = vadd.f32 %v2200_v34, %v1470_v28  ;;  %v1485_v24 = vadd.f32 %v2080_v31, %v1645_v14 }
 0x330   : > { %v1479_v35 = vpop.f32.mrf.mxu1 }
 0x331   : > { %1509 = vst [vmem:[%s2778_s13 + $0x28] sm:$0xff] %v1501_v32  ;;  %v1500_v37 = vmax.f32 %v1492_v22, 0.0  ;;  %v1495_v4 = vadd.f32 %v2201_v39, %v1485_v24  ;;  %v1480_v36 = vadd.f32 %v1645_v14, %v1479_v35 }
 0x333   : > { %1508 = vst [vmem:[%s2778_s13 + $0x20] sm:$0xff] %v1500_v37  ;;  %v1503_v42 = vmax.f32 %v1495_v4, 0.0  ;;  %v1494_v41 = vadd.f32 %v2202_v40, %v1480_v36 }
 0x335   : > { %1511 = vst [vmem:[%s2778_s13 + $0x38] sm:$0xff] %v1503_v42  ;;  %v1502_v44 = vmax.f32 %v1494_v41, 0.0 }
 0x337   : > { %1510 = vst [vmem:[%s2778_s13 + $0x30] sm:$0xff] %v1502_v44 }
 0x338   : > { %2322 = shalt.err (!%p2319_p10)
}
 0x339   : > { %s2323_s23 = scalar_lea.hbm %s2799_s29, 1024  ;;  %s2327_s17 = scalar_lea.hbm %s2849_s5, 2048 }
 0x33a   : > { %p2324_p6 = scmp.ne.s32.totalorder %s2799_s29, %s2323_s23  ;;  %p2328_p3 = scmp.lt.s32.totalorder %s2799_s29, %s2849_s5 }
 0x33b   : > { %p2329_p11 = scmp.lt.s32.totalorder %s2327_s17, %s2323_s23 }
 0x33c   : > { %p2325_p4 = pnand %p2324_p6, %p2882_p1 }
 0x33d   : > { %p2330_p5 = por %p2329_p11, %p2328_p3 }
 0x33e   : > { %p2326_p8 = pneg %p2325_p4 }
 0x340   : > { %p2331_p7 = pnand %p2330_p5, %p2326_p8 }
 0x342   : > { %2334 = shalt.err (!%p2331_p7)
}
 0x343   : > { %s2391_s9 = smov 128   ;;  %s2392_s16 = smov 8  }
 0x344   : > { %2127 = dma.vmem_to_hbm [thread:$0]  (%p2882_p1), %s2792_s14, 1024, %s2799_s29, %s1513_s10, %s2391_s9, %s2391_s9, %s2392_s16  }
 0x345 PF: > { %s1541_s30 = sand.u32 1, %s2369_s18   ;;  %p2883_p12 = scmp.ne.s32.totalorder %s2856_s25, 0 }
 0x346   : > { %p2884_p9 = scmp.ge.s32.totalorder %s2381_s21, 2  ;;  %s1542_s8 = scalar_lea.sflag [#allocation6], %s1541_s30 }
 0x348   : > { %p2144_p13 = pnand %p2884_p9, %p2883_p12 }
 0x34a   : > { %p2145_p0 = pneg %p2144_p13 }
 0x34c   : > { %2364 = dma.done.wait (%p2145_p0), %s1542_s8, 1024  }
 0x34d   : > { %2366 = vsyncadd (%p2145_p0), %s1542_s8, 4294966272  ;;  %p20_p2 = scmp.ge.s32.totalorder %s2512_s28, 4   ;;  %s2885_s18 = smov %s2373_s19 }
 0x34e   : > { %s2886_s19 = smov %s2377_s20  ;;  %s2887_s20 = smov %s2522_s6 }
 0x34f   : > { %s2888_s21 = smov %s2512_s28  ;;  %22 = sbr.rel (!%p20_p2) target bundleno = 7 (0x7), region = 100 }
 0x354   :  { %1547 = vsyncpa [#allocation5], 1 }
 0x355   :  { %1549 = vsyncpa [#allocation5 + $0x1], 1 }
 0x356   :  { %1550 = vsyncpa [#allocation8], 1 }
 0x357   :  { %1551 = vsyncpa [#allocation11], 1 }
 0x358   :  { %1552 = vsyncpa [#allocation6], 1 }
 0x359   :  { %1554 = vsyncpa [#allocation6 + $0x1], 1 }

</bundles_post_ra>
